<compile_context>
chip_gen: v7x
topology: tpu7x:2x2x1
jax: 0.10.0
libtpu: 0.0.40
codegen_flags: <defaults>
</compile_context>

<pallas_src>
import numpy as np
import jax
import jax.numpy as jnp
from jax import lax
from jax.experimental import pallas as pl
from jax.experimental.pallas import tpu as pltpu

SCALE = 1.0
H1 = max(10, int(SCALE * 120))                 # fc1 out = 120
H2 = max(10, int(np.sqrt(SCALE * 120)))        # fc2 out = 10
OUT = 10

IMG = 28
NPIX = IMG * IMG                               # 784 flattened input pixels

# conv1 banding: pooled conv1 output is 3ch x 12 x 12 -> 4 bands of 3 rows.
N_BANDS = 4
BAND_ROWS = 3                                  # pooled rows per band
BAND_W = 128                                   # per-band / per-phase column width (108 used)
P1 = N_BANDS * BAND_W                          # 512-wide pooled-conv1 feature vector
P2 = 128                                       # pooled-conv2 feature width (75 used)
# 128-aligned K windows of the flattened 28x28 image feeding each band.
K_START = (0, 128, 256, 384)
K_SIZE = (384, 384, 384, 400)


def _round_up(n, m):
    return ((n + m - 1) // m) * m


def _p1_col(ic, h, w):
    """Column of pooled-conv1 element (channel ic, row h, col w) in the banded layout."""
    band, il = divmod(h, BAND_ROWS)
    return band * BAND_W + ic * 36 + il * 12 + w


# --------------------------------------------------------------------------
# Kernel: whole forward for one batch tile.
# --------------------------------------------------------------------------
def _phase_max(m):
    # m: [Bt, 4*n] -- max over the four 2x2-pooling phases (128-aligned slices).
    n = m.shape[-1] // 4
    return jnp.maximum(jnp.maximum(m[:, 0 * n:1 * n], m[:, 1 * n:2 * n]),
                       jnp.maximum(m[:, 2 * n:3 * n], m[:, 3 * n:4 * n]))


def _model_kernel(x_ref, wc1b0, wc1b1, wc1b2, wc1b3, bc1_ref,
                  wc2_ref, bc2_ref, wf1_ref, bf1_ref, wf2_ref, bf2_ref,
                  wf3_ref, bf3_ref, o_ref):
    f32 = jnp.float32
    wc1 = (wc1b0, wc1b1, wc1b2, wc1b3)

    # conv1 -> relu -> maxpool2, as 4 row-band matmuls.  Each band weight is
    # [K_b, 4*128] (4 maxpool phases concatenated along N) so a single MXU
    # push per band; maxpool(relu(conv + b)) == relu(max_phases(conv) + b).
    bands = []
    for b in range(N_BANDS):
        xa = x_ref[:, K_START[b]:K_START[b] + K_SIZE[b]]              # bf16 [Bt, K_b]
        m = jnp.dot(xa, wc1[b][...], preferred_element_type=f32)      # [Bt, 512]
        bands.append(_phase_max(m))                                   # [Bt, 128]
    p1 = jnp.concatenate(bands, axis=-1)                              # [Bt, 512]
    p1 = jnp.maximum(p1 + bc1_ref[...], 0.0)

    # conv2 -> relu -> maxpool2: one fused 4-phase matmul + VPU slice max.
    m2 = jnp.dot(p1.astype(wc2_ref.dtype), wc2_ref[...],
                 preferred_element_type=f32)                          # [Bt, 512]
    p2 = jnp.maximum(_phase_max(m2) + bc2_ref[...], 0.0)              # [Bt, 128]

    def fc(a, w_ref, b_ref):
        return jnp.dot(a.astype(w_ref.dtype), w_ref[...],
                       preferred_element_type=f32) + b_ref[...]

    z1 = jnp.maximum(fc(p2, wf1_ref, bf1_ref), 0.0)                   # [Bt, 128]
    z2 = jnp.maximum(fc(z1, wf2_ref, bf2_ref), 0.0)                   # [Bt, 128]
    o_ref[...] = fc(z2, wf3_ref, bf3_ref).astype(o_ref.dtype)         # [Bt, 128]


# --------------------------------------------------------------------------
# Host-side weight repacking (exact algebra, done once per parameter set).
# --------------------------------------------------------------------------
def pack_params(params, dtype=jnp.bfloat16):
    w1 = np.asarray(params["w1"], np.float32)            # [3,1,5,5]
    b1 = np.asarray(params["b1"], np.float32)            # [3]
    w2 = np.asarray(params["w2"], np.float32)            # [3,3,3,3]
    b2 = np.asarray(params["b2"], np.float32)            # [3]
    fc1_w = np.asarray(params["fc1_w"], np.float32)      # [H1, 75]
    fc1_b = np.asarray(params["fc1_b"], np.float32)
    fc2_w = np.asarray(params["fc2_w"], np.float32)      # [H2, H1]
    fc2_b = np.asarray(params["fc2_b"], np.float32)
    fc3_w = np.asarray(params["fc3_w"], np.float32)      # [10, H2]
    fc3_b = np.asarray(params["fc3_b"], np.float32)

    # conv1 (1->3, 5x5, valid) fused with 2x2 maxpool, banded: band `bd` holds
    # pooled rows i = 3*bd + il.  Column ph*128 + c*36 + il*12 + j of band
    # matrix `bd` produces conv1[c, 2i+pr, 2j+pc] (phase ph = 2*pr+pc); rows
    # index the flattened image restricted to [K_START[bd], K_START[bd]+K_SIZE[bd]).
    wc1 = [np.zeros((K_SIZE[bd], 4 * BAND_W), np.float32) for bd in range(N_BANDS)]
    bc1 = np.zeros((1, P1), np.float32)
    for bd in range(N_BANDS):
        for pr in range(2):
            for pc in range(2):
                ph = 2 * pr + pc
                for c in range(3):
                    for il in range(BAND_ROWS):
                        i = BAND_ROWS * bd + il
                        for j in range(12):
                            col = ph * BAND_W + c * 36 + il * 12 + j
                            r, s = 2 * i + pr, 2 * j + pc
                            for di in range(5):
                                for dj in range(5):
                                    row = (r + di) * IMG + (s + dj) - K_START[bd]
                                    wc1[bd][row, col] = w1[c, 0, di, dj]
    for c in range(3):
        for h in range(12):
            for w in range(12):
                bc1[0, _p1_col(c, h, w)] = b1[c]

    # conv2 (3->3, 3x3, valid) fused with 2x2 maxpool, all 4 phases
    # concatenated along N.  Column ph*128 + oc*25 + u*5 + v produces
    # conv2[oc, 2u+pr, 2v+pc] -- exactly the (c,h,w) flatten order fc1 expects.
    # Rows use the banded pooled-conv1 layout above (padded rows stay zero).
    wc2 = np.zeros((P1, 4 * P2), np.float32)
    bc2 = np.zeros((1, P2), np.float32)
    for pr in range(2):
        for pc in range(2):
            ph = 2 * pr + pc
            for oc in range(3):
                for u in range(5):
                    for v in range(5):
                        col = ph * P2 + oc * 25 + u * 5 + v
                        r, s = 2 * u + pr, 2 * v + pc
                        for ic in range(3):
                            for di in range(3):
                                for dj in range(3):
                                    wc2[_p1_col(ic, r + di, s + dj), col] = w2[oc, ic, di, dj]
    for oc in range(3):
        bc2[0, oc * 25:(oc + 1) * 25] = b2[oc]

    # FC weights / biases, zero-padded to lane-dense 128-wide tiles.
    h1p = _round_up(max(H1, 1), 128)
    h2p = _round_up(max(H2, 1), 128)
    outp = _round_up(OUT, 128)
    wf1 = np.zeros((P2, h1p), np.float32); wf1[:fc1_w.shape[1], :H1] = fc1_w.T
    bf1 = np.zeros((1, h1p), np.float32);  bf1[0, :H1] = fc1_b
    wf2 = np.zeros((h1p, h2p), np.float32); wf2[:H1, :H2] = fc2_w.T
    bf2 = np.zeros((1, h2p), np.float32);   bf2[0, :H2] = fc2_b
    wf3 = np.zeros((h2p, outp), np.float32); wf3[:H2, :OUT] = fc3_w.T
    bf3 = np.zeros((1, outp), np.float32);   bf3[0, :OUT] = fc3_b

    return {
        "wc1": [jnp.asarray(w, dtype) for w in wc1],
        "bc1": jnp.asarray(bc1),
        "wc2": jnp.asarray(wc2, dtype), "bc2": jnp.asarray(bc2),
        "wf1": jnp.asarray(wf1, dtype), "bf1": jnp.asarray(bf1),
        "wf2": jnp.asarray(wf2, dtype), "bf2": jnp.asarray(bf2),
        "wf3": jnp.asarray(wf3, dtype), "bf3": jnp.asarray(bf3),
    }


# --------------------------------------------------------------------------
# Wrapper.
# --------------------------------------------------------------------------
def modular_model_forward(x_nchw, packed, *, b_tile=512):
    """x_nchw: [B, 1, 28, 28] float -> logits [B, 10] f32."""
    B = x_nchw.shape[0]
    # bf16 before padding: halves the input HBM DMA / VMEM block and any pad
    # copy; the kernel matmuls are bf16 anyway, so results are identical.
    x = x_nchw.reshape(B, -1).astype(jnp.bfloat16)          # [B, 784]

    steps = max(-(-B // b_tile), 1)
    if steps == 1 and B > 64:
        steps = 2                       # give v7x's two TensorCores a block each
    bt = _round_up(-(-B // steps), 8)   # <=8 rows of padding per grid step
    b_pad = steps * bt
    if b_pad != B:
        x = jnp.pad(x, ((0, b_pad - B), (0, 0)))

    weights = (*packed["wc1"], packed["bc1"], packed["wc2"], packed["bc2"],
               packed["wf1"], packed["bf1"], packed["wf2"], packed["bf2"],
               packed["wf3"], packed["bf3"])

    def w_spec(a):
        return pl.BlockSpec(a.shape, lambda i, n=a.ndim: (0,) * n)

    outp = packed["wf3"].shape[1]       # 128-lane-padded logits width
    out = pl.pallas_call(
        _model_kernel,
        out_shape=jax.ShapeDtypeStruct((b_pad, outp), jnp.float32),
        grid=(steps,),
        in_specs=[pl.BlockSpec((bt, NPIX), lambda i: (i, 0))]
                 + [w_spec(w) for w in weights],
        out_specs=pl.BlockSpec((bt, outp), lambda i: (i, 0)),
        compiler_params=pltpu.CompilerParams(
            dimension_semantics=("parallel",)),
    )(x, *weights)
    return out[:B, :OUT]


# --------------------------------------------------------------------------
# Pure-JAX reference and parameter init (for correctness check).
# --------------------------------------------------------------------------
def reference_forward(x_nchw, params):
    dn = ("NCHW", "OIHW", "NCHW")
    y = lax.conv_general_dilated(x_nchw, params["w1"], (1, 1), "VALID",
                                 dimension_numbers=dn)
    y = jnp.maximum(y + params["b1"].reshape(1, -1, 1, 1), 0.0)
    y = lax.reduce_window(y, -jnp.inf, lax.max, (1, 1, 2, 2), (1, 1, 2, 2), "VALID")
    y = lax.conv_general_dilated(y, params["w2"], (1, 1), "VALID",
                                 dimension_numbers=dn)
    y = jnp.maximum(y + params["b2"].reshape(1, -1, 1, 1), 0.0)
    y = lax.reduce_window(y, -jnp.inf, lax.max, (1, 1, 2, 2), (1, 1, 2, 2), "VALID")
    y = y.reshape(y.shape[0], -1)                               # [B, 75], (c,h,w)
    y = jnp.maximum(y @ params["fc1_w"].T + params["fc1_b"], 0.0)
    y = jnp.maximum(y @ params["fc2_w"].T + params["fc2_b"], 0.0)
    return y @ params["fc3_w"].T + params["fc3_b"]


def init_params(key):
    ks = jax.random.split(key, 5)
    std = 0.1
    return {
        "w1": std * jax.random.normal(ks[0], (3, 1, 5, 5), jnp.float32),
        "b1": jnp.full((3,), 0.01, jnp.float32),
        "w2": std * jax.random.normal(ks[1], (3, 3, 3, 3), jnp.float32),
        "b2": jnp.full((3,), 0.01, jnp.float32),
        "fc1_w": std * jax.random.normal(ks[2], (H1, 3 * 5 * 5), jnp.float32),
        "fc1_b": jnp.full((H1,), 0.01, jnp.float32),
        "fc2_w": std * jax.random.normal(ks[3], (H2, H1), jnp.float32),
        "fc2_b": jnp.full((H2,), 0.01, jnp.float32),
        "fc3_w": std * jax.random.normal(ks[4], (OUT, H2), jnp.float32),
        "fc3_b": jnp.full((OUT,), 0.01, jnp.float32),
    }


if __name__ == "__main__":
    key = jax.random.PRNGKey(0)
    k_x, k_p = jax.random.split(key)
    # Two valid convs + two 2x2 pools feeding a 3*5*5 flatten imply 28x28 input.
    x = jax.random.normal(k_x, (2, 1, 28, 28), jnp.float32)
    params = init_params(k_p)
    packed = pack_params(params)

    out = jax.block_until_ready(modular_model_forward(x, packed))
    ref = jax.block_until_ready(reference_forward(x, params))

    assert out.shape == (2, OUT), out.shape
    max_err = float(jnp.max(jnp.abs(out - ref)))
    assert max_err < 3e-2, f"max abs err vs reference: {max_err}"

    print("KERNEL_OK")
</pallas_src>

<mosaic_0001>
module attributes {stable_mosaic.version = 11 : i64} {
  func.func @_model_kernel(%arg0: i32, %arg1: memref<8x784xbf16, #tpu.memory_space<vmem>>, %arg2: memref<384x512xbf16, #tpu.memory_space<vmem>>, %arg3: memref<384x512xbf16, #tpu.memory_space<vmem>>, %arg4: memref<384x512xbf16, #tpu.memory_space<vmem>>, %arg5: memref<400x512xbf16, #tpu.memory_space<vmem>>, %arg6: memref<1x512xf32, #tpu.memory_space<vmem>>, %arg7: memref<512x512xbf16, #tpu.memory_space<vmem>>, %arg8: memref<1x128xf32, #tpu.memory_space<vmem>>, %arg9: memref<128x128xbf16, #tpu.memory_space<vmem>>, %arg10: memref<1x128xf32, #tpu.memory_space<vmem>>, %arg11: memref<128x128xbf16, #tpu.memory_space<vmem>>, %arg12: memref<1x128xf32, #tpu.memory_space<vmem>>, %arg13: memref<128x128xbf16, #tpu.memory_space<vmem>>, %arg14: memref<1x128xf32, #tpu.memory_space<vmem>>, %arg15: memref<8x128xf32, #tpu.memory_space<vmem>>) attributes {dimension_semantics = [#tpu.dimension_semantics<parallel>], iteration_bounds = array<i64: 1>, scalar_prefetch = 0 : i64, scratch_operands = 0 : i64, tpu.core_type = #tpu.core_type<tc>, window_params = [{transform_indices = @transform_0, window_bounds = array<i64: 8, 784>}, {pipeline_mode = #tpu.pipeline_mode<synchronous>, transform_indices = @transform_1, window_bounds = array<i64: 384, 512>}, {pipeline_mode = #tpu.pipeline_mode<synchronous>, transform_indices = @transform_2, window_bounds = array<i64: 384, 512>}, {pipeline_mode = #tpu.pipeline_mode<synchronous>, transform_indices = @transform_3, window_bounds = array<i64: 384, 512>}, {pipeline_mode = #tpu.pipeline_mode<synchronous>, transform_indices = @transform_4, window_bounds = array<i64: 400, 512>}, {pipeline_mode = #tpu.pipeline_mode<synchronous>, transform_indices = @transform_5, window_bounds = array<i64: 1, 512>}, {pipeline_mode = #tpu.pipeline_mode<synchronous>, transform_indices = @transform_6, window_bounds = array<i64: 512, 512>}, {pipeline_mode = #tpu.pipeline_mode<synchronous>, transform_indices = @transform_7, window_bounds = array<i64: 1, 128>}, {pipeline_mode = #tpu.pipeline_mode<synchronous>, transform_indices = @transform_8, window_bounds = array<i64: 128, 128>}, {pipeline_mode = #tpu.pipeline_mode<synchronous>, transform_indices = @transform_9, window_bounds = array<i64: 1, 128>}, {pipeline_mode = #tpu.pipeline_mode<synchronous>, transform_indices = @transform_10, window_bounds = array<i64: 128, 128>}, {pipeline_mode = #tpu.pipeline_mode<synchronous>, transform_indices = @transform_11, window_bounds = array<i64: 1, 128>}, {pipeline_mode = #tpu.pipeline_mode<synchronous>, transform_indices = @transform_12, window_bounds = array<i64: 128, 128>}, {pipeline_mode = #tpu.pipeline_mode<synchronous>, transform_indices = @transform_13, window_bounds = array<i64: 1, 128>}, {transform_indices = @transform_14, window_bounds = array<i64: 8, 128>}]} {
    %c0 = arith.constant 0 : index
    %c0_0 = arith.constant 0 : index
    %0 = vector.load %arg1[%c0, %c0_0] : memref<8x784xbf16, #tpu.memory_space<vmem>>, vector<8x384xbf16>
    %c0_1 = arith.constant 0 : index
    %c0_2 = arith.constant 0 : index
    %1 = vector.load %arg2[%c0_1, %c0_2] : memref<384x512xbf16, #tpu.memory_space<vmem>>, vector<384x512xbf16>
    %cst = arith.constant dense<0.000000e+00> : vector<8x512xf32>
    %2 = tpu.matmul %0, %1, %cst {dimension_numbers = #tpu.dot_dimension_numbers<[1], [0], [0], [1], [0, 0, 1, 1], [], []>} : vector<8x384xbf16>, vector<384x512xbf16>, vector<8x512xf32> -> vector<8x512xf32>
    %3 = vector.extract_strided_slice %2 {offsets = [0, 0], sizes = [8, 128], strides = [1, 1]} : vector<8x512xf32> to vector<8x128xf32>
    %4 = vector.extract_strided_slice %2 {offsets = [0, 128], sizes = [8, 128], strides = [1, 1]} : vector<8x512xf32> to vector<8x128xf32>
    %5 = arith.maximumf %3, %4 : vector<8x128xf32>
    %6 = vector.extract_strided_slice %2 {offsets = [0, 256], sizes = [8, 128], strides = [1, 1]} : vector<8x512xf32> to vector<8x128xf32>
    %7 = vector.extract_strided_slice %2 {offsets = [0, 384], sizes = [8, 128], strides = [1, 1]} : vector<8x512xf32> to vector<8x128xf32>
    %8 = arith.maximumf %6, %7 : vector<8x128xf32>
    %9 = arith.maximumf %5, %8 : vector<8x128xf32>
    %c0_3 = arith.constant 0 : index
    %c128 = arith.constant 128 : index
    %10 = vector.load %arg1[%c0_3, %c128] : memref<8x784xbf16, #tpu.memory_space<vmem>>, vector<8x384xbf16>
    %c0_4 = arith.constant 0 : index
    %c0_5 = arith.constant 0 : index
    %11 = vector.load %arg3[%c0_4, %c0_5] : memref<384x512xbf16, #tpu.memory_space<vmem>>, vector<384x512xbf16>
    %cst_6 = arith.constant dense<0.000000e+00> : vector<8x512xf32>
    %12 = tpu.matmul %10, %11, %cst_6 {dimension_numbers = #tpu.dot_dimension_numbers<[1], [0], [0], [1], [0, 0, 1, 1], [], []>} : vector<8x384xbf16>, vector<384x512xbf16>, vector<8x512xf32> -> vector<8x512xf32>
    %13 = vector.extract_strided_slice %12 {offsets = [0, 0], sizes = [8, 128], strides = [1, 1]} : vector<8x512xf32> to vector<8x128xf32>
    %14 = vector.extract_strided_slice %12 {offsets = [0, 128], sizes = [8, 128], strides = [1, 1]} : vector<8x512xf32> to vector<8x128xf32>
    %15 = arith.maximumf %13, %14 : vector<8x128xf32>
    %16 = vector.extract_strided_slice %12 {offsets = [0, 256], sizes = [8, 128], strides = [1, 1]} : vector<8x512xf32> to vector<8x128xf32>
    %17 = vector.extract_strided_slice %12 {offsets = [0, 384], sizes = [8, 128], strides = [1, 1]} : vector<8x512xf32> to vector<8x128xf32>
    %18 = arith.maximumf %16, %17 : vector<8x128xf32>
    %19 = arith.maximumf %15, %18 : vector<8x128xf32>
    %c0_7 = arith.constant 0 : index
    %c256 = arith.constant 256 : index
    %20 = vector.load %arg1[%c0_7, %c256] : memref<8x784xbf16, #tpu.memory_space<vmem>>, vector<8x384xbf16>
    %c0_8 = arith.constant 0 : index
    %c0_9 = arith.constant 0 : index
    %21 = vector.load %arg4[%c0_8, %c0_9] : memref<384x512xbf16, #tpu.memory_space<vmem>>, vector<384x512xbf16>
    %cst_10 = arith.constant dense<0.000000e+00> : vector<8x512xf32>
    %22 = tpu.matmul %20, %21, %cst_10 {dimension_numbers = #tpu.dot_dimension_numbers<[1], [0], [0], [1], [0, 0, 1, 1], [], []>} : vector<8x384xbf16>, vector<384x512xbf16>, vector<8x512xf32> -> vector<8x512xf32>
    %23 = vector.extract_strided_slice %22 {offsets = [0, 0], sizes = [8, 128], strides = [1, 1]} : vector<8x512xf32> to vector<8x128xf32>
    %24 = vector.extract_strided_slice %22 {offsets = [0, 128], sizes = [8, 128], strides = [1, 1]} : vector<8x512xf32> to vector<8x128xf32>
    %25 = arith.maximumf %23, %24 : vector<8x128xf32>
    %26 = vector.extract_strided_slice %22 {offsets = [0, 256], sizes = [8, 128], strides = [1, 1]} : vector<8x512xf32> to vector<8x128xf32>
    %27 = vector.extract_strided_slice %22 {offsets = [0, 384], sizes = [8, 128], strides = [1, 1]} : vector<8x512xf32> to vector<8x128xf32>
    %28 = arith.maximumf %26, %27 : vector<8x128xf32>
    %29 = arith.maximumf %25, %28 : vector<8x128xf32>
    %c0_11 = arith.constant 0 : index
    %c384 = arith.constant 384 : index
    %30 = vector.load %arg1[%c0_11, %c384] : memref<8x784xbf16, #tpu.memory_space<vmem>>, vector<8x400xbf16>
    %c0_12 = arith.constant 0 : index
    %c0_13 = arith.constant 0 : index
    %31 = vector.load %arg5[%c0_12, %c0_13] : memref<400x512xbf16, #tpu.memory_space<vmem>>, vector<400x512xbf16>
    %cst_14 = arith.constant dense<0.000000e+00> : vector<8x512xf32>
    %32 = tpu.matmul %30, %31, %cst_14 {dimension_numbers = #tpu.dot_dimension_numbers<[1], [0], [0], [1], [0, 0, 1, 1], [], []>} : vector<8x400xbf16>, vector<400x512xbf16>, vector<8x512xf32> -> vector<8x512xf32>
    %33 = vector.extract_strided_slice %32 {offsets = [0, 0], sizes = [8, 128], strides = [1, 1]} : vector<8x512xf32> to vector<8x128xf32>
    %34 = vector.extract_strided_slice %32 {offsets = [0, 128], sizes = [8, 128], strides = [1, 1]} : vector<8x512xf32> to vector<8x128xf32>
    %35 = arith.maximumf %33, %34 : vector<8x128xf32>
    %36 = vector.extract_strided_slice %32 {offsets = [0, 256], sizes = [8, 128], strides = [1, 1]} : vector<8x512xf32> to vector<8x128xf32>
    %37 = vector.extract_strided_slice %32 {offsets = [0, 384], sizes = [8, 128], strides = [1, 1]} : vector<8x512xf32> to vector<8x128xf32>
    %38 = arith.maximumf %36, %37 : vector<8x128xf32>
    %39 = arith.maximumf %35, %38 : vector<8x128xf32>
    %40 = tpu.concatenate %9, %19, %29, %39 in 1 : vector<8x128xf32>, vector<8x128xf32>, vector<8x128xf32>, vector<8x128xf32> -> vector<8x512xf32>
    %c0_15 = arith.constant 0 : index
    %c0_16 = arith.constant 0 : index
    %41 = vector.load %arg6[%c0_15, %c0_16] : memref<1x512xf32, #tpu.memory_space<vmem>>, vector<1x512xf32>
    %42 = vector.broadcast %41 : vector<1x512xf32> to vector<8x512xf32>
    %43 = arith.addf %40, %42 : vector<8x512xf32>
    %cst_17 = arith.constant 0.000000e+00 : f32
    %44 = vector.broadcast %cst_17 : f32 to vector<8x512xf32>
    %45 = arith.maximumf %43, %44 : vector<8x512xf32>
    %46 = arith.truncf %45 : vector<8x512xf32> to vector<8x512xbf16>
    %c0_18 = arith.constant 0 : index
    %c0_19 = arith.constant 0 : index
    %47 = vector.load %arg7[%c0_18, %c0_19] : memref<512x512xbf16, #tpu.memory_space<vmem>>, vector<512x512xbf16>
    %cst_20 = arith.constant dense<0.000000e+00> : vector<8x512xf32>
    %48 = tpu.matmul %46, %47, %cst_20 {dimension_numbers = #tpu.dot_dimension_numbers<[1], [0], [0], [1], [0, 0, 1, 1], [], []>} : vector<8x512xbf16>, vector<512x512xbf16>, vector<8x512xf32> -> vector<8x512xf32>
    %49 = vector.extract_strided_slice %48 {offsets = [0, 0], sizes = [8, 128], strides = [1, 1]} : vector<8x512xf32> to vector<8x128xf32>
    %50 = vector.extract_strided_slice %48 {offsets = [0, 128], sizes = [8, 128], strides = [1, 1]} : vector<8x512xf32> to vector<8x128xf32>
    %51 = arith.maximumf %49, %50 : vector<8x128xf32>
    %52 = vector.extract_strided_slice %48 {offsets = [0, 256], sizes = [8, 128], strides = [1, 1]} : vector<8x512xf32> to vector<8x128xf32>
    %53 = vector.extract_strided_slice %48 {offsets = [0, 384], sizes = [8, 128], strides = [1, 1]} : vector<8x512xf32> to vector<8x128xf32>
    %54 = arith.maximumf %52, %53 : vector<8x128xf32>
    %55 = arith.maximumf %51, %54 : vector<8x128xf32>
    %c0_21 = arith.constant 0 : index
    %c0_22 = arith.constant 0 : index
    %56 = vector.load %arg8[%c0_21, %c0_22] : memref<1x128xf32, #tpu.memory_space<vmem>>, vector<1x128xf32>
    %57 = vector.broadcast %56 : vector<1x128xf32> to vector<8x128xf32>
    %58 = arith.addf %55, %57 : vector<8x128xf32>
    %cst_23 = arith.constant 0.000000e+00 : f32
    %59 = vector.broadcast %cst_23 : f32 to vector<8x128xf32>
    %60 = arith.maximumf %58, %59 : vector<8x128xf32>
    %61 = arith.truncf %60 : vector<8x128xf32> to vector<8x128xbf16>
    %c0_24 = arith.constant 0 : index
    %c0_25 = arith.constant 0 : index
    %62 = vector.load %arg9[%c0_24, %c0_25] : memref<128x128xbf16, #tpu.memory_space<vmem>>, vector<128x128xbf16>
    %cst_26 = arith.constant dense<0.000000e+00> : vector<8x128xf32>
    %63 = tpu.matmul %61, %62, %cst_26 {dimension_numbers = #tpu.dot_dimension_numbers<[1], [0], [0], [1], [0, 0, 1, 1], [], []>} : vector<8x128xbf16>, vector<128x128xbf16>, vector<8x128xf32> -> vector<8x128xf32>
    %c0_27 = arith.constant 0 : index
    %c0_28 = arith.constant 0 : index
    %64 = vector.load %arg10[%c0_27, %c0_28] : memref<1x128xf32, #tpu.memory_space<vmem>>, vector<1x128xf32>
    %65 = vector.broadcast %64 : vector<1x128xf32> to vector<8x128xf32>
    %66 = arith.addf %63, %65 : vector<8x128xf32>
    %cst_29 = arith.constant 0.000000e+00 : f32
    %67 = vector.broadcast %cst_29 : f32 to vector<8x128xf32>
    %68 = arith.maximumf %66, %67 : vector<8x128xf32>
    %69 = arith.truncf %68 : vector<8x128xf32> to vector<8x128xbf16>
    %c0_30 = arith.constant 0 : index
    %c0_31 = arith.constant 0 : index
    %70 = vector.load %arg11[%c0_30, %c0_31] : memref<128x128xbf16, #tpu.memory_space<vmem>>, vector<128x128xbf16>
    %cst_32 = arith.constant dense<0.000000e+00> : vector<8x128xf32>
    %71 = tpu.matmul %69, %70, %cst_32 {dimension_numbers = #tpu.dot_dimension_numbers<[1], [0], [0], [1], [0, 0, 1, 1], [], []>} : vector<8x128xbf16>, vector<128x128xbf16>, vector<8x128xf32> -> vector<8x128xf32>
    %c0_33 = arith.constant 0 : index
    %c0_34 = arith.constant 0 : index
    %72 = vector.load %arg12[%c0_33, %c0_34] : memref<1x128xf32, #tpu.memory_space<vmem>>, vector<1x128xf32>
    %73 = vector.broadcast %72 : vector<1x128xf32> to vector<8x128xf32>
    %74 = arith.addf %71, %73 : vector<8x128xf32>
    %cst_35 = arith.constant 0.000000e+00 : f32
    %75 = vector.broadcast %cst_35 : f32 to vector<8x128xf32>
    %76 = arith.maximumf %74, %75 : vector<8x128xf32>
    %77 = arith.truncf %76 : vector<8x128xf32> to vector<8x128xbf16>
    %c0_36 = arith.constant 0 : index
    %c0_37 = arith.constant 0 : index
    %78 = vector.load %arg13[%c0_36, %c0_37] : memref<128x128xbf16, #tpu.memory_space<vmem>>, vector<128x128xbf16>
    %cst_38 = arith.constant dense<0.000000e+00> : vector<8x128xf32>
    %79 = tpu.matmul %77, %78, %cst_38 {dimension_numbers = #tpu.dot_dimension_numbers<[1], [0], [0], [1], [0, 0, 1, 1], [], []>} : vector<8x128xbf16>, vector<128x128xbf16>, vector<8x128xf32> -> vector<8x128xf32>
    %c0_39 = arith.constant 0 : index
    %c0_40 = arith.constant 0 : index
    %80 = vector.load %arg14[%c0_39, %c0_40] : memref<1x128xf32, #tpu.memory_space<vmem>>, vector<1x128xf32>
    %81 = vector.broadcast %80 : vector<1x128xf32> to vector<8x128xf32>
    %82 = arith.addf %79, %81 : vector<8x128xf32>
    %c0_41 = arith.constant 0 : index
    %c0_42 = arith.constant 0 : index
    %83 = vector.load %arg15[%c0_41, %c0_42] : memref<8x128xf32, #tpu.memory_space<vmem>>, vector<8x128xf32>
    tpu.vector_store %arg15[%c0_41, %c0_42], %82 {strides = array<i32>} : memref<8x128xf32, #tpu.memory_space<vmem>>, vector<8x128xf32>,
    return
  }
  func.func @transform_0(%arg0: i32) -> (i32, i32) {
    %c0_i32 = arith.constant 0 : i32
    %c0_i32_0 = arith.constant 0 : i32
    return %arg0, %c0_i32 : i32, i32
  }
  func.func @transform_1(%arg0: i32) -> (i32, i32) {
    %c0_i32 = arith.constant 0 : i32
    %c0_i32_0 = arith.constant 0 : i32
    %c0_i32_1 = arith.constant 0 : i32
    return %c0_i32, %c0_i32_0 : i32, i32
  }
  func.func @transform_2(%arg0: i32) -> (i32, i32) {
    %c0_i32 = arith.constant 0 : i32
    %c0_i32_0 = arith.constant 0 : i32
    %c0_i32_1 = arith.constant 0 : i32
    return %c0_i32, %c0_i32_0 : i32, i32
  }
  func.func @transform_3(%arg0: i32) -> (i32, i32) {
    %c0_i32 = arith.constant 0 : i32
    %c0_i32_0 = arith.constant 0 : i32
    %c0_i32_1 = arith.constant 0 : i32
    return %c0_i32, %c0_i32_0 : i32, i32
  }
  func.func @transform_4(%arg0: i32) -> (i32, i32) {
    %c0_i32 = arith.constant 0 : i32
    %c0_i32_0 = arith.constant 0 : i32
    %c0_i32_1 = arith.constant 0 : i32
    return %c0_i32, %c0_i32_0 : i32, i32
  }
  func.func @transform_5(%arg0: i32) -> (i32, i32) {
    %c0_i32 = arith.constant 0 : i32
    %c0_i32_0 = arith.constant 0 : i32
    %c0_i32_1 = arith.constant 0 : i32
    return %c0_i32, %c0_i32_0 : i32, i32
  }
  func.func @transform_6(%arg0: i32) -> (i32, i32) {
    %c0_i32 = arith.constant 0 : i32
    %c0_i32_0 = arith.constant 0 : i32
    %c0_i32_1 = arith.constant 0 : i32
    return %c0_i32, %c0_i32_0 : i32, i32
  }
  func.func @transform_7(%arg0: i32) -> (i32, i32) {
    %c0_i32 = arith.constant 0 : i32
    %c0_i32_0 = arith.constant 0 : i32
    %c0_i32_1 = arith.constant 0 : i32
    return %c0_i32, %c0_i32_0 : i32, i32
  }
  func.func @transform_8(%arg0: i32) -> (i32, i32) {
    %c0_i32 = arith.constant 0 : i32
    %c0_i32_0 = arith.constant 0 : i32
    %c0_i32_1 = arith.constant 0 : i32
    return %c0_i32, %c0_i32_0 : i32, i32
  }
  func.func @transform_9(%arg0: i32) -> (i32, i32) {
    %c0_i32 = arith.constant 0 : i32
    %c0_i32_0 = arith.constant 0 : i32
    %c0_i32_1 = arith.constant 0 : i32
    return %c0_i32, %c0_i32_0 : i32, i32
  }
  func.func @transform_10(%arg0: i32) -> (i32, i32) {
    %c0_i32 = arith.constant 0 : i32
    %c0_i32_0 = arith.constant 0 : i32
    %c0_i32_1 = arith.constant 0 : i32
    return %c0_i32, %c0_i32_0 : i32, i32
  }
  func.func @transform_11(%arg0: i32) -> (i32, i32) {
    %c0_i32 = arith.constant 0 : i32
    %c0_i32_0 = arith.constant 0 : i32
    %c0_i32_1 = arith.constant 0 : i32
    return %c0_i32, %c0_i32_0 : i32, i32
  }
  func.func @transform_12(%arg0: i32) -> (i32, i32) {
    %c0_i32 = arith.constant 0 : i32
    %c0_i32_0 = arith.constant 0 : i32
    %c0_i32_1 = arith.constant 0 : i32
    return %c0_i32, %c0_i32_0 : i32, i32
  }
  func.func @transform_13(%arg0: i32) -> (i32, i32) {
    %c0_i32 = arith.constant 0 : i32
    %c0_i32_0 = arith.constant 0 : i32
    %c0_i32_1 = arith.constant 0 : i32
    return %c0_i32, %c0_i32_0 : i32, i32
  }
  func.func @transform_14(%arg0: i32) -> (i32, i32) {
    %c0_i32 = arith.constant 0 : i32
    %c0_i32_0 = arith.constant 0 : i32
    return %arg0, %c0_i32 : i32, i32
  }
}

</mosaic_0001>

<bundles_post_ra>
// kernel: tpu_custom_call.1
= control target key start
LH: loop header
LB: loop body
LE: loop exit
PB: predicated region body
PF: predicated region fallthrough
CT: control target
= control target key end

     0   :  { %19 = vsyncpa [#allocation3], 0  ;;  %s6631_s0 = inlined_call_operand.hbm [shape: bf16[8,784], index: 0, kind: input, shape index: {}]   ;;  %s6632_s1 = inlined_call_operand.hbm [shape: bf16[384,512], index: 1, kind: input, shape index: {}]   ;;  %s6633_s2 = inlined_call_operand.hbm [shape: bf16[384,512], index: 2, kind: input, shape index: {}]   ;;  %s6634_s3 = inlined_call_operand.hbm [shape: bf16[384,512], index: 3, kind: input, shape index: {}]   ;;  %s6635_s4 = inlined_call_operand.hbm [shape: bf16[400,512], index: 4, kind: input, shape index: {}]   ;;  %s6636_s5 = inlined_call_operand.vmem [shape: f32[1,512], index: 5, kind: input, shape index: {}]   ;;  %s6637_s6 = inlined_call_operand.hbm [shape: bf16[512,512], index: 6, kind: input, shape index: {}]   ;;  %s6638_s7 = inlined_call_operand.vmem [shape: f32[1,128], index: 7, kind: input, shape index: {}]   ;;  %s6639_s8 = inlined_call_operand.hbm [shape: bf16[128,128], index: 8, kind: input, shape index: {}]   ;;  %s6640_s9 = inlined_call_operand.vmem [shape: f32[1,128], index: 9, kind: input, shape index: {}]   ;;  %s6641_s10 = inlined_call_operand.hbm [shape: bf16[128,128], index: 10, kind: input, shape index: {}]   ;;  %s6642_s11 = inlined_call_operand.vmem [shape: f32[1,128], index: 11, kind: input, shape index: {}]   ;;  %s6643_s12 = inlined_call_operand.hbm [shape: bf16[128,128], index: 12, kind: input, shape index: {}]   ;;  %s6644_s13 = inlined_call_operand.vmem [shape: f32[1,128], index: 13, kind: input, shape index: {}]   ;;  %s6645_s14 = inlined_call_operand.hbm [shape: f32[8,128], index: 14, kind: output, shape index: {}]  }
   0x1   :  { %20 = vsyncpa [#allocation6], 0 }
   0x2   :  { %21 = vsyncpa [#allocation9], 0 }
   0x3   :  { %22 = vsyncpa [#allocation12], 0 }
   0x4   :  { %23 = vsyncpa [#allocation15], 0 }
   0x5   :  { %24 = vsyncpa [#allocation4], 0  ;;  %s6305_s29 = smov [#allocation5]   ;;  %s6073_s17 = scalar_lea.hbm %s6632_s1, 12288 }
   0x6   :  { %s40_s30 = sshll.u32 %s6305_s29, 4  ;;  %p6074_p0 = scmp.ne.s32.totalorder %s6632_s1, %s6073_s17  ;;  %s41_s30 = int_to_ptr.vmem [resolvable:$true] %s40_s30 }
   0x7   :  { %p6077_p1 = scmp.lt.u32.totalorder %s6073_s17, %s6632_s1 }
   0x9   :  { %p6079_p2 = pnand %p6077_p1, %p6074_p0 }
   0xb   :  { %6082 = shalt.err (!%p6079_p2)
}
   0xc   :  { %s6083_s22 = scalar_lea.vmem %s41_s30, 12288  ;;  %p6088_p4 = scmp.lt.s32.totalorder %s41_s30, %s41_s30 }
   0xd   :  { %p6084_p3 = scmp.ne.s32.totalorder %s41_s30, %s6083_s22  ;;  %p6089_p5 = scmp.lt.s32.totalorder %s6083_s22, %s6083_s22 }
   0xf   :  { %p6090_p6 = por %p6089_p5, %p6088_p4 }
  0x11   :  { %p6091_p7 = pnand %p6090_p6, %p6084_p3 }
  0x13   :  { %6094 = shalt.err (!%p6091_p7)
}
  0x14   :  { %s6306_s23 = smov 256   ;;  %s6307_s24 = smov 16  }
  0x15   :  { %46 = dma.hbm_to_vmem [thread:$0]  %s6632_s1, 12288, %s41_s30, [#allocation6], %s6306_s23, %s6306_s23, %s6307_s24  }
  0x16   :  { %s6308_s27 = smov [#allocation8]   ;;  %s6309_s29 = smov [#allocation11]  }
  0x17   :  { %s64_s28 = sshll.u32 %s6308_s27, 4  ;;  %s90_s15 = sshll.u32 %s6309_s29, 4  ;;  %s65_s28 = int_to_ptr.vmem [resolvable:$true] %s64_s28  ;;  %s91_s15 = int_to_ptr.vmem [resolvable:$true] %s90_s15 }
  0x18   :  { %s6095_s18 = scalar_lea.hbm %s6634_s3, 12288 }
  0x19   :  { %p6096_p8 = scmp.ne.s32.totalorder %s6634_s3, %s6095_s18  ;;  %p6099_p9 = scmp.lt.u32.totalorder %s6095_s18, %s6634_s3 }
  0x1b   :  { %p6101_p10 = pnand %p6099_p9, %p6096_p8 }
  0x1d   :  { %6104 = shalt.err (!%p6101_p10)
}
  0x1e   :  { %s6105_s1 = scalar_lea.vmem %s65_s28, 12288  ;;  %p6110_p12 = scmp.lt.s32.totalorder %s65_s28, %s65_s28 }
  0x1f   :  { %p6106_p11 = scmp.ne.s32.totalorder %s65_s28, %s6105_s1  ;;  %p6111_p13 = scmp.lt.s32.totalorder %s6105_s1, %s6105_s1 }
  0x21   :  { %p6112_p0 = por %p6111_p13, %p6110_p12 }
  0x23   :  { %p6113_p1 = pnand %p6112_p0, %p6106_p11 }
  0x25   :  { %6116 = shalt.err (!%p6113_p1)
}
  0x26   :  { %70 = dma.hbm_to_vmem [thread:$0]  %s6634_s3, 12288, %s65_s28, [#allocation9], %s6306_s23, %s6306_s23, %s6307_s24  }
  0x27   :  { %s6117_s29 = scalar_lea.hbm %s6637_s6, 16384 }
  0x28   :  { %p6118_p2 = scmp.ne.s32.totalorder %s6637_s6, %s6117_s29  ;;  %p6121_p3 = scmp.lt.u32.totalorder %s6117_s29, %s6637_s6 }
  0x2a   :  { %p6123_p4 = pnand %p6121_p3, %p6118_p2 }
  0x2c   :  { %6126 = shalt.err (!%p6123_p4)
}
  0x2d   :  { %s6127_s20 = scalar_lea.vmem %s91_s15, 16384  ;;  %p6132_p6 = scmp.lt.s32.totalorder %s91_s15, %s91_s15 }
  0x2e   :  { %p6128_p5 = scmp.ne.s32.totalorder %s91_s15, %s6127_s20  ;;  %p6133_p7 = scmp.lt.s32.totalorder %s6127_s20, %s6127_s20 }
  0x30   :  { %p6134_p8 = por %p6133_p7, %p6132_p6 }
  0x32   :  { %p6135_p9 = pnand %p6134_p8, %p6128_p5 }
  0x34   :  { %6138 = shalt.err (!%p6135_p9)
}
  0x35   :  { %96 = dma.hbm_to_vmem [thread:$0]  %s6637_s6, 16384, %s91_s15, [#allocation12], %s6306_s23, %s6306_s23, %s6307_s24  }
  0x36   :  { %s6310_s21 = smov [#allocation14]   ;;  %s6311_s1 = smov [#allocation2]  }
  0x37   :  { %s118_s22 = sshll.u32 %s6310_s21, 4  ;;  %s31_s30 = sshll.u32 %s6311_s1, 4  ;;  %s119_s22 = int_to_ptr.vmem [resolvable:$true] %s118_s22  ;;  %s32_s30 = int_to_ptr.vmem [resolvable:$true] %s31_s30 }
  0x38   :  { %s6139_s27 = scalar_lea.hbm %s6641_s10, 1024 }
  0x39   :  { %p6140_p10 = scmp.ne.s32.totalorder %s6641_s10, %s6139_s27  ;;  %p6143_p11 = scmp.lt.u32.totalorder %s6139_s27, %s6641_s10 }
  0x3b   :  { %p6145_p12 = pnand %p6143_p11, %p6140_p10 }
  0x3d   :  { %6148 = shalt.err (!%p6145_p12)
}
  0x3e   :  { %s6149_s6 = scalar_lea.vmem %s119_s22, 1024  ;;  %p6154_p0 = scmp.lt.s32.totalorder %s119_s22, %s119_s22 }
  0x3f   :  { %p6150_p13 = scmp.ne.s32.totalorder %s119_s22, %s6149_s6  ;;  %p6155_p1 = scmp.lt.s32.totalorder %s6149_s6, %s6149_s6 }
  0x41   :  { %p6156_p2 = por %p6155_p1, %p6154_p0 }
  0x43   :  { %p6157_p3 = pnand %p6156_p2, %p6150_p13 }
  0x45   :  { %6160 = shalt.err (!%p6157_p3)
}
  0x46   :  { %s6312_s15 = smov 64   ;;  %s6313_s19 = smov 4  }
  0x47   :  { %124 = dma.hbm_to_vmem [thread:$0]  %s6641_s10, 1024, %s119_s22, [#allocation15], %s6312_s15, %s6312_s15, %s6313_s19  }
  0x48   :  { %s6161_s1 = scalar_lea.hbm %s6631_s0, 448 }
  0x49   :  { %p6162_p4 = scmp.ne.s32.totalorder %s6631_s0, %s6161_s1  ;;  %p6165_p5 = scmp.lt.u32.totalorder %s6161_s1, %s6631_s0 }
  0x4b   :  { %p6167_p6 = pnand %p6165_p5, %p6162_p4 }
  0x4d   :  { %6170 = shalt.err (!%p6167_p6)
}
  0x4e   :  { %s6171_s16 = scalar_lea.vmem %s32_s30, 448  ;;  %p6176_p8 = scmp.lt.s32.totalorder %s32_s30, %s32_s30 }
  0x4f   :  { %p6172_p7 = scmp.ne.s32.totalorder %s32_s30, %s6171_s16  ;;  %p6177_p9 = scmp.lt.s32.totalorder %s6171_s16, %s6171_s16 }
  0x51   :  { %p6178_p10 = por %p6177_p9, %p6176_p8 }
  0x53   :  { %p6179_p11 = pnand %p6178_p10, %p6172_p7 }
  0x55   :  { %6182 = shalt.err (!%p6179_p11)
}
  0x56   :  { %34 = dma.hbm_to_vmem [thread:$0]  %s6631_s0, 448, %s32_s30, [#allocation3]  }
  0x57   :  { %s6314_s17 = smov [#allocation7]   ;;  %s6315_s6 = smov [#allocation10]  }
  0x58   :  { %s52_s18 = sshll.u32 %s6314_s17, 4  ;;  %s76_s20 = sshll.u32 %s6315_s6, 4  ;;  %s53_s18 = int_to_ptr.vmem [resolvable:$true] %s52_s18  ;;  %s77_s20 = int_to_ptr.vmem [resolvable:$true] %s76_s20 }
  0x59   :  { %s6183_s21 = scalar_lea.hbm %s6633_s2, 12288 }
  0x5a   :  { %p6184_p12 = scmp.ne.s32.totalorder %s6633_s2, %s6183_s21  ;;  %p6187_p13 = scmp.lt.u32.totalorder %s6183_s21, %s6633_s2 }
  0x5c   :  { %p6189_p0 = pnand %p6187_p13, %p6184_p12 }
  0x5e   :  { %6192 = shalt.err (!%p6189_p0)
}
  0x5f   :  { %s6193_s0 = scalar_lea.vmem %s53_s18, 12288  ;;  %p6198_p2 = scmp.lt.s32.totalorder %s53_s18, %s53_s18 }
  0x60   :  { %p6194_p1 = scmp.ne.s32.totalorder %s53_s18, %s6193_s0  ;;  %p6199_p3 = scmp.lt.s32.totalorder %s6193_s0, %s6193_s0 }
  0x62   :  { %p6200_p4 = por %p6199_p3, %p6198_p2 }
  0x64   :  { %p6201_p5 = pnand %p6200_p4, %p6194_p1 }
  0x66   :  { %6204 = shalt.err (!%p6201_p5)
}
  0x67   :  { %58 = dma.hbm_to_vmem [thread:$0]  %s6633_s2, 12288, %s53_s18, [#allocation6], %s6306_s23, %s6306_s23, %s6307_s24  }
  0x68   :  { %s6205_s22 = scalar_lea.hbm %s6635_s4, 12800 }
  0x69   :  { %p6206_p6 = scmp.ne.s32.totalorder %s6635_s4, %s6205_s22  ;;  %p6209_p7 = scmp.lt.u32.totalorder %s6205_s22, %s6635_s4 }
  0x6b   :  { %p6211_p8 = pnand %p6209_p7, %p6206_p6 }
  0x6d   :  { %6214 = shalt.err (!%p6211_p8)
}
  0x6e   :  { %s6215_s21 = scalar_lea.vmem %s77_s20, 12800  ;;  %p6220_p10 = scmp.lt.s32.totalorder %s77_s20, %s77_s20 }
  0x6f   :  { %p6216_p9 = scmp.ne.s32.totalorder %s77_s20, %s6215_s21  ;;  %p6221_p11 = scmp.lt.s32.totalorder %s6215_s21, %s6215_s21 }
  0x71   :  { %p6222_p12 = por %p6221_p11, %p6220_p10 }
  0x73   :  { %p6223_p13 = pnand %p6222_p12, %p6216_p9 }
  0x75   :  { %6226 = shalt.err (!%p6223_p13)
}
  0x76   :  { %82 = dma.hbm_to_vmem [thread:$0]  %s6635_s4, 12800, %s77_s20, [#allocation9], %s6306_s23, %s6306_s23, %s6307_s24  }
  0x77   :  { %s6316_s1 = smov [#allocation13]   ;;  %s6317_s26 = smov [#allocation16]  }
  0x78   :  { %s104_s25 = sshll.u32 %s6316_s1, 4  ;;  %s132_s27 = sshll.u32 %s6317_s26, 4  ;;  %s105_s25 = int_to_ptr.vmem [resolvable:$true] %s104_s25  ;;  %s133_s27 = int_to_ptr.vmem [resolvable:$true] %s132_s27 }
  0x79   :  { %s6227_s29 = scalar_lea.hbm %s6639_s8, 1024 }
  0x7a   :  { %p6228_p0 = scmp.ne.s32.totalorder %s6639_s8, %s6227_s29  ;;  %p6231_p1 = scmp.lt.u32.totalorder %s6227_s29, %s6639_s8 }
  0x7c   :  { %p6233_p2 = pnand %p6231_p1, %p6228_p0 }
  0x7e   :  { %6236 = shalt.err (!%p6233_p2)
}
  0x7f   :  { %s6237_s4 = scalar_lea.vmem %s105_s25, 1024  ;;  %p6242_p4 = scmp.lt.s32.totalorder %s105_s25, %s105_s25 }
  0x80   :  { %p6238_p3 = scmp.ne.s32.totalorder %s105_s25, %s6237_s4  ;;  %p6243_p5 = scmp.lt.s32.totalorder %s6237_s4, %s6237_s4 }
  0x82   :  { %p6244_p6 = por %p6243_p5, %p6242_p4 }
  0x84   :  { %p6245_p7 = pnand %p6244_p6, %p6238_p3 }
  0x86   :  { %6248 = shalt.err (!%p6245_p7)
}
  0x87   :  { %110 = dma.hbm_to_vmem [thread:$0]  %s6639_s8, 1024, %s105_s25, [#allocation12], %s6312_s15, %s6312_s15, %s6313_s19  }
  0x88   :  { %s6249_s3 = scalar_lea.hbm %s6643_s12, 1024 }
  0x89   :  { %p6250_p8 = scmp.ne.s32.totalorder %s6643_s12, %s6249_s3  ;;  %p6253_p9 = scmp.lt.u32.totalorder %s6249_s3, %s6643_s12 }
  0x8b   :  { %p6255_p10 = pnand %p6253_p9, %p6250_p8 }
  0x8d   :  { %6258 = shalt.err (!%p6255_p10)
}
  0x8e   :  { %s6259_s1 = scalar_lea.vmem %s133_s27, 1024  ;;  %p6264_p12 = scmp.lt.s32.totalorder %s133_s27, %s133_s27 }
  0x8f   :  { %p6260_p11 = scmp.ne.s32.totalorder %s133_s27, %s6259_s1  ;;  %p6265_p13 = scmp.lt.s32.totalorder %s6259_s1, %s6259_s1 }
  0x91   :  { %p6266_p0 = por %p6265_p13, %p6264_p12 }
  0x93   :  { %p6267_p1 = pnand %p6266_p0, %p6260_p11 }
  0x95   :  { %6270 = shalt.err (!%p6267_p1)
}
  0x96   :  { %138 = dma.hbm_to_vmem [thread:$0]  %s6643_s12, 1024, %s133_s27, [#allocation15], %s6312_s15, %s6312_s15, %s6313_s19  }
  0x97   :  { %6293 = dma.done.wait [#allocation3], 448  }
  0x98   :  { %6294 = vsyncadd [#allocation3], 4294966848 }
  0x99   :  { %6295 = dma.done.wait [#allocation6], 24576  }
  0x9a   :  { %6296 = vsyncadd [#allocation6], 4294942720 }
  0x9b   :  { %6297 = dma.done.wait [#allocation9], 25088  }
  0x9c   :  { %6298 = vsyncadd [#allocation9], 4294942208 }
  0x9d   :  { %6299 = dma.done.wait [#allocation12], 17408  }
  0x9e   :  { %6300 = vsyncadd [#allocation12], 4294949888 }
  0x9f   :  { %6301 = dma.done.wait [#allocation15], 2048  }
  0xa0   :  { %6302 = vsyncadd [#allocation15], 4294965248  ;;  %v5262_v0 = vld [vmem:[#allocation5 + $0x4] ss:$16 sps:$4 sm:$0xff]   ;;  %v5264_v1 = vld [vmem:[#allocation5 + $0xc] ss:$16 sps:$4 sm:$0xff]  }
  0xa1   :  { %758 = vmatprep.subr.bf16.mxu0 %v5262_v0  ;;  %v5266_v2 = vld [vmem:[#allocation5] ss:$16 sps:$4 sm:$0xff]   ;;  %v5267_v3 = vld [vmem:[#allocation5 + $0x8] ss:$16 sps:$4 sm:$0xff]   ;;  %840 = vmatprep.subr.bf16.mxu1 %v5264_v1  ;;  %v5268_v4 = vld [vmem:[#allocation5 + $0x24] ss:$16 sps:$4 sm:$0xff]  }
  0xa2   :  { %759 = vmatpush1.bf16.msra.mxu0 %v5266_v2  ;;  %841 = vmatpush1.bf16.msra.mxu1 %v5267_v3  ;;  %v5270_v5 = vld [vmem:[#allocation5 + $0x2c] ss:$16 sps:$4 sm:$0xff]   ;;  %v5272_v6 = vld [vmem:[#allocation5 + $0x20] ss:$16 sps:$4 sm:$0xff]   ;;  %v5273_v7 = vld [vmem:[#allocation5 + $0x28] ss:$16 sps:$4 sm:$0xff]  }
  0xa3   :  { %760 = vmatprep.subr.bf16.mxu0 %v5268_v4  ;;  %842 = vmatprep.subr.bf16.mxu1 %v5270_v5  ;;  %v5274_v8 = vld [vmem:[#allocation5 + $0x44] ss:$16 sps:$4 sm:$0xff]   ;;  %v5276_v9 = vld [vmem:[#allocation5 + $0x4c] ss:$16 sps:$4 sm:$0xff]   ;;  %v5278_v10 = vld [vmem:[#allocation5 + $0x40] ss:$16 sps:$4 sm:$0xff]  }
  0xa4   :  { %v5279_v11 = vld [vmem:[#allocation5 + $0x48] ss:$16 sps:$4 sm:$0xff]   ;;  %v5280_v12 = vld [vmem:[#allocation5 + $0x64] ss:$16 sps:$4 sm:$0xff]   ;;  %v5282_v13 = vld [vmem:[#allocation5 + $0x6c] ss:$16 sps:$4 sm:$0xff]  }
  0xa5   :  { %v5284_v14 = vld [vmem:[#allocation5 + $0x60] ss:$16 sps:$4 sm:$0xff]   ;;  %v5285_v15 = vld [vmem:[#allocation5 + $0x68] ss:$16 sps:$4 sm:$0xff]   ;;  %v5286_v16 = vld [vmem:[#allocation5 + $0x84] ss:$16 sps:$4 sm:$0xff]  }
  0xa6   :  { %761 = vmatpush1.bf16.msra.mxu0 %v5272_v6  ;;  %843 = vmatpush1.bf16.msra.mxu1 %v5273_v7  ;;  %v5288_v17 = vld [vmem:[#allocation5 + $0x8c] ss:$16 sps:$4 sm:$0xff]   ;;  %v5290_v18 = vld [vmem:[#allocation5 + $0x80] ss:$16 sps:$4 sm:$0xff]   ;;  %v5291_v19 = vld [vmem:[#allocation5 + $0x88] ss:$16 sps:$4 sm:$0xff]  }
  0xa7   :  { %762 = vmatprep.subr.bf16.mxu0 %v5274_v8  ;;  %844 = vmatprep.subr.bf16.mxu1 %v5276_v9  ;;  %v5292_v20 = vld [vmem:[#allocation5 + $0xa4] ss:$16 sps:$4 sm:$0xff]   ;;  %v5294_v21 = vld [vmem:[#allocation5 + $0xac] ss:$16 sps:$4 sm:$0xff]   ;;  %v5296_v22 = vld [vmem:[#allocation5 + $0xa0] ss:$16 sps:$4 sm:$0xff]  }
  0xa8   :  { %v5297_v23 = vld [vmem:[#allocation5 + $0xa8] ss:$16 sps:$4 sm:$0xff]   ;;  %v5298_v24 = vld [vmem:[#allocation5 + $0xc4] ss:$16 sps:$4 sm:$0xff]   ;;  %v5300_v25 = vld [vmem:[#allocation5 + $0xcc] ss:$16 sps:$4 sm:$0xff]  }
  0xa9   :  { %v5302_v26 = vld [vmem:[#allocation5 + $0xc0] ss:$16 sps:$4 sm:$0xff]   ;;  %v5303_v27 = vld [vmem:[#allocation5 + $0xc8] ss:$16 sps:$4 sm:$0xff]   ;;  %v5304_v28 = vld [vmem:[#allocation5 + $0xe4] ss:$16 sps:$4 sm:$0xff]  }
  0xaa   :  { %763 = vmatpush1.bf16.msra.mxu0 %v5278_v10  ;;  %845 = vmatpush1.bf16.msra.mxu1 %v5279_v11  ;;  %v5306_v29 = vld [vmem:[#allocation5 + $0xec] ss:$16 sps:$4 sm:$0xff]   ;;  %v5308_v30 = vld [vmem:[#allocation5 + $0xe0] ss:$16 sps:$4 sm:$0xff]   ;;  %v5309_v31 = vld [vmem:[#allocation5 + $0xe8] ss:$16 sps:$4 sm:$0xff]  }
  0xab   :  { %764 = vmatprep.subr.bf16.mxu0 %v5280_v12  ;;  %846 = vmatprep.subr.bf16.mxu1 %v5282_v13  ;;  %v5310_v32 = vld [vmem:[#allocation5 + $0x104] ss:$16 sps:$4 sm:$0xff]   ;;  %v5312_v33 = vld [vmem:[#allocation5 + $0x10c] ss:$16 sps:$4 sm:$0xff]   ;;  %v5314_v34 = vld [vmem:[#allocation5 + $0x100] ss:$16 sps:$4 sm:$0xff]  }
  0xac   :  { %v5315_v35 = vld [vmem:[#allocation5 + $0x108] ss:$16 sps:$4 sm:$0xff]   ;;  %v5316_v36 = vld [vmem:[#allocation5 + $0x124] ss:$16 sps:$4 sm:$0xff]   ;;  %v5318_v37 = vld [vmem:[#allocation5 + $0x12c] ss:$16 sps:$4 sm:$0xff]  }
  0xad   :  { %v5320_v38 = vld [vmem:[#allocation5 + $0x120] ss:$16 sps:$4 sm:$0xff]   ;;  %v5321_v39 = vld [vmem:[#allocation5 + $0x128] ss:$16 sps:$4 sm:$0xff]   ;;  %v5322_v40 = vld [vmem:[#allocation5 + $0x144] ss:$16 sps:$4 sm:$0xff]  }
  0xae   :  { %765 = vmatpush1.bf16.msra.mxu0 %v5284_v14  ;;  %847 = vmatpush1.bf16.msra.mxu1 %v5285_v15  ;;  %v5324_v41 = vld [vmem:[#allocation5 + $0x14c] ss:$16 sps:$4 sm:$0xff]   ;;  %v5326_v42 = vld [vmem:[#allocation5 + $0x140] ss:$16 sps:$4 sm:$0xff]   ;;  %v5327_v43 = vld [vmem:[#allocation5 + $0x148] ss:$16 sps:$4 sm:$0xff]  }
  0xaf   :  { %766 = vmatprep.subr.bf16.mxu0 %v5286_v16  ;;  %848 = vmatprep.subr.bf16.mxu1 %v5288_v17  ;;  %v5328_v44 = vld [vmem:[#allocation5 + $0x164] ss:$16 sps:$4 sm:$0xff]   ;;  %v5330_v45 = vld [vmem:[#allocation5 + $0x16c] ss:$16 sps:$4 sm:$0xff]   ;;  %v5332_v47 = vld [vmem:[#allocation5 + $0x160] ss:$16 sps:$4 sm:$0xff]  }
  0xb0   :  { %v169_v46 = vld [vmem:[#allocation2] sm:$0xff]  ;;  %v5336_v51 = vld [vmem:[#allocation5 + $0x18c] ss:$16 sps:$4 sm:$0xff]   ;;  %v5338_v52 = vld [vmem:[#allocation5 + $0x180] ss:$16 sps:$4 sm:$0xff]   ;;  %v6318_v13 = vmov 0  }
  0xb1   :  { %v4560_v48 = vcombine.high %v169_v46, %v169_v46  ;;  %v5333_v49 = vld [vmem:[#allocation5 + $0x168] ss:$16 sps:$4 sm:$0xff]   ;;  %v5334_v50 = vld [vmem:[#allocation5 + $0x184] ss:$16 sps:$4 sm:$0xff]   ;;  %v5342_v55 = vld [vmem:[#allocation5 + $0x1ac] ss:$16 sps:$4 sm:$0xff]   ;;  %v4559_v4 = vcombine.low %v169_v46, %v169_v46 }
  0xb2   :  { %767 = vmatpush1.bf16.msra.mxu0 %v5290_v18  ;;  %849 = vmatpush1.bf16.msra.mxu1 %v5291_v19  ;;  %v5339_v53 = vld [vmem:[#allocation5 + $0x188] ss:$16 sps:$4 sm:$0xff]   ;;  %v5340_v54 = vld [vmem:[#allocation5 + $0x1a4] ss:$16 sps:$4 sm:$0xff]   ;;  %v5344_v56 = vld [vmem:[#allocation5 + $0x1a0] ss:$16 sps:$4 sm:$0xff]  }
  0xb3   :  { %768 = vmatprep.subr.bf16.mxu0 %v5292_v20  ;;  %850 = vmatprep.subr.bf16.mxu1 %v5294_v21  ;;  %v5345_v57 = vld [vmem:[#allocation5 + $0x1a8] ss:$16 sps:$4 sm:$0xff]   ;;  %v5346_v58 = vld [vmem:[#allocation5 + $0x1c4] ss:$16 sps:$4 sm:$0xff]   ;;  %v5348_v59 = vld [vmem:[#allocation5 + $0x1cc] ss:$16 sps:$4 sm:$0xff]  }
  0xb4   :  { %790 = vmatprep.mubr.bf16.mxu0 %v4560_v48  ;;  %872 = vmatprep.mubr.bf16.mxu1 %v4560_v48  ;;  %v5350_v60 = vld [vmem:[#allocation5 + $0x1c0] ss:$16 sps:$4 sm:$0xff]   ;;  %v5351_v61 = vld [vmem:[#allocation5 + $0x1c8] ss:$16 sps:$4 sm:$0xff]   ;;  %v5352_v62 = vld [vmem:[#allocation5 + $0x1e4] ss:$16 sps:$4 sm:$0xff]  }
  0xb5   :  { %v5354_v63 = vld [vmem:[#allocation5 + $0x1ec] ss:$16 sps:$4 sm:$0xff]   ;;  %v5356_v0 = vld [vmem:[#allocation5 + $0x1e0] ss:$16 sps:$4 sm:$0xff]   ;;  %v5357_v1 = vld [vmem:[#allocation5 + $0x1e8] ss:$16 sps:$4 sm:$0xff]  }
  0xb6   :  { %769 = vmatpush1.bf16.msra.mxu0 %v5296_v22  ;;  %851 = vmatpush1.bf16.msra.mxu1 %v5297_v23  ;;  %v5362_v2 = vld [vmem:[#allocation5 + $0x204] ss:$16 sps:$4 sm:$0xff]   ;;  %v5365_v3 = vld [vmem:[#allocation5 + $0x20c] ss:$16 sps:$4 sm:$0xff]   ;;  %v5360_v5 = vld [vmem:[#allocation5 + $0x200] ss:$16 sps:$4 sm:$0xff]  }
  0xb7   :  { %770 = vmatprep.subr.bf16.mxu0 %v5298_v24  ;;  %852 = vmatprep.subr.bf16.mxu1 %v5300_v25  ;;  %v5363_v6 = vld [vmem:[#allocation5 + $0x208] ss:$16 sps:$4 sm:$0xff]   ;;  %v5368_v7 = vld [vmem:[#allocation5 + $0x224] ss:$16 sps:$4 sm:$0xff]   ;;  %v5371_v8 = vld [vmem:[#allocation5 + $0x22c] ss:$16 sps:$4 sm:$0xff]  }
  0xb8   :  { %v5366_v9 = vld [vmem:[#allocation5 + $0x220] ss:$16 sps:$4 sm:$0xff]   ;;  %v5369_v10 = vld [vmem:[#allocation5 + $0x228] ss:$16 sps:$4 sm:$0xff]   ;;  %v5374_v11 = vld [vmem:[#allocation5 + $0x244] ss:$16 sps:$4 sm:$0xff]  }
  0xb9   :  { %v5377_v12 = vld [vmem:[#allocation5 + $0x24c] ss:$16 sps:$4 sm:$0xff]   ;;  %v5372_v14 = vld [vmem:[#allocation5 + $0x240] ss:$16 sps:$4 sm:$0xff]   ;;  %v5375_v15 = vld [vmem:[#allocation5 + $0x248] ss:$16 sps:$4 sm:$0xff]  }
  0xba   :  { %771 = vmatpush1.bf16.msra.mxu0 %v5302_v26  ;;  %853 = vmatpush1.bf16.msra.mxu1 %v5303_v27  ;;  %v5380_v16 = vld [vmem:[#allocation5 + $0x264] ss:$16 sps:$4 sm:$0xff]   ;;  %v5383_v17 = vld [vmem:[#allocation5 + $0x26c] ss:$16 sps:$4 sm:$0xff]   ;;  %v5378_v18 = vld [vmem:[#allocation5 + $0x260] ss:$16 sps:$4 sm:$0xff]  }
  0xbb   :  { %772 = vmatprep.subr.bf16.mxu0 %v5304_v28  ;;  %854 = vmatprep.subr.bf16.mxu1 %v5306_v29  ;;  %v5381_v19 = vld [vmem:[#allocation5 + $0x268] ss:$16 sps:$4 sm:$0xff]   ;;  %v5386_v20 = vld [vmem:[#allocation5 + $0x284] ss:$16 sps:$4 sm:$0xff]   ;;  %v5389_v21 = vld [vmem:[#allocation5 + $0x28c] ss:$16 sps:$4 sm:$0xff]  }
  0xbc   :  { %v5384_v22 = vld [vmem:[#allocation5 + $0x280] ss:$16 sps:$4 sm:$0xff]   ;;  %v5387_v23 = vld [vmem:[#allocation5 + $0x288] ss:$16 sps:$4 sm:$0xff]   ;;  %v5392_v24 = vld [vmem:[#allocation5 + $0x2a4] ss:$16 sps:$4 sm:$0xff]  }
  0xbd   :  { %v5395_v25 = vld [vmem:[#allocation5 + $0x2ac] ss:$16 sps:$4 sm:$0xff]   ;;  %v5390_v26 = vld [vmem:[#allocation5 + $0x2a0] ss:$16 sps:$4 sm:$0xff]   ;;  %v5393_v27 = vld [vmem:[#allocation5 + $0x2a8] ss:$16 sps:$4 sm:$0xff]  }
  0xbe   :  { %773 = vmatpush1.bf16.msra.mxu0 %v5308_v30  ;;  %855 = vmatpush1.bf16.msra.mxu1 %v5309_v31  ;;  %v5398_v28 = vld [vmem:[#allocation5 + $0x2c4] ss:$16 sps:$4 sm:$0xff]   ;;  %v5401_v29 = vld [vmem:[#allocation5 + $0x2cc] ss:$16 sps:$4 sm:$0xff]   ;;  %v5396_v30 = vld [vmem:[#allocation5 + $0x2c0] ss:$16 sps:$4 sm:$0xff]  }
  0xbf   :  { %774 = vmatprep.subr.bf16.mxu0 %v5310_v32  ;;  %856 = vmatprep.subr.bf16.mxu1 %v5312_v33  ;;  %v5399_v31 = vld [vmem:[#allocation5 + $0x2c8] ss:$16 sps:$4 sm:$0xff]   ;;  %v5404_v32 = vld [vmem:[#allocation5 + $0x2e4] ss:$16 sps:$4 sm:$0xff]   ;;  %v5407_v33 = vld [vmem:[#allocation5 + $0x2ec] ss:$16 sps:$4 sm:$0xff]  }
  0xc0   :  { %v5426_v46 = vld [vmem:[#allocation7 + $0x4c] ss:$16 sps:$4 sm:$0xff]   ;;  %v5424_v48 = vld [vmem:[#allocation7 + $0x48] ss:$16 sps:$4 sm:$0xff]   ;;  %vm3052_vm0 = vcmask 130048   ;;  %vm6320_vm1 = vmmov 0  }
  0xc1   :  { %s6321_s29 = smov [#allocation17]  }
  0xc2   :  { %775 = vmatpush1.bf16.msra.mxu0 %v5314_v34  ;;  %857 = vmatpush1.bf16.msra.mxu1 %v5315_v35  ;;  %v5402_v34 = vld [vmem:[#allocation5 + $0x2e0] ss:$16 sps:$4 sm:$0xff]   ;;  %v5405_v35 = vld [vmem:[#allocation5 + $0x2e8] ss:$16 sps:$4 sm:$0xff]   ;;  %s4546_s16 = sshll.u32 %s6321_s29, 4  ;;  %s4547_s16 = int_to_ptr.vmem [resolvable:$true] %s4546_s16 }
  0xc3   :  { %776 = vmatprep.subr.bf16.mxu0 %v5316_v36  ;;  %858 = vmatprep.subr.bf16.mxu1 %v5318_v37  ;;  %v5411_v36 = vld [vmem:[#allocation7 + $0x4] ss:$16 sps:$4 sm:$0xff]   ;;  %v5414_v37 = vld [vmem:[#allocation7 + $0xc] ss:$16 sps:$4 sm:$0xff]   ;;  %p6276_p3 = scmp.lt.s32.totalorder %s4547_s16, %s4547_s16 }
  0xc6   :  { %777 = vmatpush1.bf16.msra.mxu0 %v5320_v38  ;;  %859 = vmatpush1.bf16.msra.mxu1 %v5321_v39  ;;  %v5408_v38 = vld [vmem:[#allocation2 + $0x8] ss:$0 sps:$4 sm:$0xff]   ;;  %v5409_v39 = vld [vmem:[#allocation7] ss:$16 sps:$4 sm:$0xff]  }
  0xc7   :  { %778 = vmatprep.subr.bf16.mxu0 %v5322_v40  ;;  %860 = vmatprep.subr.bf16.mxu1 %v5324_v41  ;;  %v5412_v40 = vld [vmem:[#allocation7 + $0x8] ss:$16 sps:$4 sm:$0xff]   ;;  %v5417_v41 = vld [vmem:[#allocation7 + $0x24] ss:$16 sps:$4 sm:$0xff]  }
  0xca   :  { %779 = vmatpush1.bf16.msra.mxu0 %v5326_v42  ;;  %861 = vmatpush1.bf16.msra.mxu1 %v5327_v43  ;;  %v5420_v42 = vld [vmem:[#allocation7 + $0x2c] ss:$16 sps:$4 sm:$0xff]   ;;  %v5415_v43 = vld [vmem:[#allocation7 + $0x20] ss:$16 sps:$4 sm:$0xff]  }
  0xcb   :  { %780 = vmatprep.subr.bf16.mxu0 %v5328_v44  ;;  %862 = vmatprep.subr.bf16.mxu1 %v5330_v45  ;;  %v5418_v44 = vld [vmem:[#allocation7 + $0x28] ss:$16 sps:$4 sm:$0xff]   ;;  %v5423_v45 = vld [vmem:[#allocation7 + $0x44] ss:$16 sps:$4 sm:$0xff]  }
  0xce   :  { %781 = vmatpush1.bf16.msra.mxu0 %v5332_v47  ;;  %863 = vmatpush1.bf16.msra.mxu1 %v5333_v49  ;;  %v5421_v47 = vld [vmem:[#allocation7 + $0x40] ss:$16 sps:$4 sm:$0xff]   ;;  %v5429_v49 = vld [vmem:[#allocation7 + $0x64] ss:$16 sps:$4 sm:$0xff]  }
  0xcf   :  { %782 = vmatprep.subr.bf16.mxu0 %v5334_v50  ;;  %864 = vmatprep.subr.bf16.mxu1 %v5336_v51  ;;  %v5432_v50 = vld [vmem:[#allocation7 + $0x6c] ss:$16 sps:$4 sm:$0xff]   ;;  %v5427_v51 = vld [vmem:[#allocation7 + $0x60] ss:$16 sps:$4 sm:$0xff]  }
  0xd2   :  { %783 = vmatpush1.bf16.msra.mxu0 %v5338_v52  ;;  %865 = vmatpush1.bf16.msra.mxu1 %v5339_v53  ;;  %v5430_v52 = vld [vmem:[#allocation7 + $0x68] ss:$16 sps:$4 sm:$0xff]  }
  0xd3   :  { %784 = vmatprep.subr.bf16.mxu0 %v5340_v54  ;;  %866 = vmatprep.subr.bf16.mxu1 %v5342_v55  ;;  %v6531_v53 = vld [vmem:[#allocation2 + $0x4] sm:$0xff]  ;;  %v5435_v54 = vld [vmem:[#allocation7 + $0x84] ss:$16 sps:$4 sm:$0xff]  }
  0xd4   :  { %v4659_v55 = vcombine.high %v6531_v53, %v6531_v53 }
  0xd6   :  { %785 = vmatpush1.bf16.msra.mxu0 %v5344_v56  ;;  %867 = vmatpush1.bf16.msra.mxu1 %v5345_v57  ;;  %v5438_v56 = vld [vmem:[#allocation7 + $0x8c] ss:$16 sps:$4 sm:$0xff]   ;;  %v5433_v57 = vld [vmem:[#allocation7 + $0x80] ss:$16 sps:$4 sm:$0xff]  }
  0xd7   :  { %786 = vmatprep.subr.bf16.mxu0 %v5346_v58  ;;  %868 = vmatprep.subr.bf16.mxu1 %v5348_v59  ;;  %v5436_v58 = vld [vmem:[#allocation7 + $0x88] ss:$16 sps:$4 sm:$0xff]   ;;  %v5441_v59 = vld [vmem:[#allocation7 + $0xa4] ss:$16 sps:$4 sm:$0xff]  }
  0xda   :  { %787 = vmatpush1.bf16.msra.mxu0 %v5350_v60  ;;  %869 = vmatpush1.bf16.msra.mxu1 %v5351_v61  ;;  %v5444_v60 = vld [vmem:[#allocation7 + $0xac] ss:$16 sps:$4 sm:$0xff]   ;;  %v5439_v61 = vld [vmem:[#allocation7 + $0xa0] ss:$16 sps:$4 sm:$0xff]  }
  0xdb   :  { %788 = vmatprep.subr.bf16.mxu0 %v5352_v62  ;;  %870 = vmatprep.subr.bf16.mxu1 %v5354_v63  ;;  %v5442_v62 = vld [vmem:[#allocation7 + $0xa8] ss:$16 sps:$4 sm:$0xff]   ;;  %v5447_v63 = vld [vmem:[#allocation7 + $0xc4] ss:$16 sps:$4 sm:$0xff]  }
  0xde   :  { %789 = vmatpush1.bf16.msra.mxu0 %v5356_v0  ;;  %871 = vmatpush1.bf16.msra.mxu1 %v5357_v1  ;;  %v5450_v0 = vld [vmem:[#allocation7 + $0xcc] ss:$16 sps:$4 sm:$0xff]   ;;  %v5445_v1 = vld [vmem:[#allocation7 + $0xc0] ss:$16 sps:$4 sm:$0xff]  }
  0xdf   :  { %799 = vmatprep.subr.bf16.mxu0 %v5362_v2  ;;  %881 = vmatprep.subr.bf16.mxu1 %v5365_v3  ;;  %v5448_v2 = vld [vmem:[#allocation7 + $0xc8] ss:$16 sps:$4 sm:$0xff]   ;;  %v5453_v3 = vld [vmem:[#allocation7 + $0xe4] ss:$16 sps:$4 sm:$0xff]  }
  0xe1   :  { %791 = vmatmul.mubr.bf16.vlgmr.msra.gmra.mrb[0].mxu0 %v4559_v4  ;;  %873 = vmatmul.mubr.bf16.vlgmr.msra.gmra.mrb[0].mxu1 %v4559_v4  ;;  %v5456_v4 = vld [vmem:[#allocation7 + $0xec] ss:$16 sps:$4 sm:$0xff]  }
  0xe2   :  { %800 = vmatpush1.bf16.msra.mxu0 %v5360_v5  ;;  %882 = vmatpush1.bf16.msra.mxu1 %v5363_v6  ;;  %v5451_v5 = vld [vmem:[#allocation7 + $0xe0] ss:$16 sps:$4 sm:$0xff]   ;;  %v5454_v6 = vld [vmem:[#allocation7 + $0xe8] ss:$16 sps:$4 sm:$0xff]  }
  0xe3   :  { %801 = vmatprep.subr.bf16.mxu0 %v5368_v7  ;;  %883 = vmatprep.subr.bf16.mxu1 %v5371_v8  ;;  %v5459_v7 = vld [vmem:[#allocation7 + $0x104] ss:$16 sps:$4 sm:$0xff]   ;;  %v5462_v8 = vld [vmem:[#allocation7 + $0x10c] ss:$16 sps:$4 sm:$0xff]  }
  0xe4   :  { %831 = vmatprep.mubr.bf16.mxu0 %v6318_v13  ;;  %913 = vmatprep.mubr.bf16.mxu1 %v6318_v13 }
  0xe6   :  { %802 = vmatpush1.bf16.msra.mxu0 %v5366_v9  ;;  %884 = vmatpush1.bf16.msra.mxu1 %v5369_v10  ;;  %v5457_v9 = vld [vmem:[#allocation7 + $0x100] ss:$16 sps:$4 sm:$0xff]   ;;  %v5460_v10 = vld [vmem:[#allocation7 + $0x108] ss:$16 sps:$4 sm:$0xff]  }
  0xe7   :  { %803 = vmatprep.subr.bf16.mxu0 %v5374_v11  ;;  %885 = vmatprep.subr.bf16.mxu1 %v5377_v12  ;;  %v5465_v11 = vld [vmem:[#allocation7 + $0x124] ss:$16 sps:$4 sm:$0xff]   ;;  %v5468_v12 = vld [vmem:[#allocation7 + $0x12c] ss:$16 sps:$4 sm:$0xff]  }
  0xea   :  { %804 = vmatpush1.bf16.msra.mxu0 %v5372_v14  ;;  %886 = vmatpush1.bf16.msra.mxu1 %v5375_v15  ;;  %v5463_v14 = vld [vmem:[#allocation7 + $0x120] ss:$16 sps:$4 sm:$0xff]   ;;  %v5466_v15 = vld [vmem:[#allocation7 + $0x128] ss:$16 sps:$4 sm:$0xff]  }
  0xeb   :  { %805 = vmatprep.subr.bf16.mxu0 %v5380_v16  ;;  %887 = vmatprep.subr.bf16.mxu1 %v5383_v17  ;;  %v5471_v16 = vld [vmem:[#allocation7 + $0x144] ss:$16 sps:$4 sm:$0xff]   ;;  %v5474_v17 = vld [vmem:[#allocation7 + $0x14c] ss:$16 sps:$4 sm:$0xff]  }
  0xee   :  { %806 = vmatpush1.bf16.msra.mxu0 %v5378_v18  ;;  %888 = vmatpush1.bf16.msra.mxu1 %v5381_v19  ;;  %v5469_v18 = vld [vmem:[#allocation7 + $0x140] ss:$16 sps:$4 sm:$0xff]   ;;  %v5472_v19 = vld [vmem:[#allocation7 + $0x148] ss:$16 sps:$4 sm:$0xff]  }
  0xef   :  { %807 = vmatprep.subr.bf16.mxu0 %v5386_v20  ;;  %889 = vmatprep.subr.bf16.mxu1 %v5389_v21  ;;  %v5477_v20 = vld [vmem:[#allocation7 + $0x164] ss:$16 sps:$4 sm:$0xff]   ;;  %v5480_v21 = vld [vmem:[#allocation7 + $0x16c] ss:$16 sps:$4 sm:$0xff]  }
  0xf2   :  { %808 = vmatpush1.bf16.msra.mxu0 %v5384_v22  ;;  %890 = vmatpush1.bf16.msra.mxu1 %v5387_v23  ;;  %v5475_v22 = vld [vmem:[#allocation7 + $0x160] ss:$16 sps:$4 sm:$0xff]   ;;  %v5478_v23 = vld [vmem:[#allocation7 + $0x168] ss:$16 sps:$4 sm:$0xff]  }
  0xf3   :  { %809 = vmatprep.subr.bf16.mxu0 %v5392_v24  ;;  %891 = vmatprep.subr.bf16.mxu1 %v5395_v25  ;;  %v5483_v24 = vld [vmem:[#allocation7 + $0x184] ss:$16 sps:$4 sm:$0xff]   ;;  %v5486_v25 = vld [vmem:[#allocation7 + $0x18c] ss:$16 sps:$4 sm:$0xff]  }
  0xf6   :  { %810 = vmatpush1.bf16.msra.mxu0 %v5390_v26  ;;  %892 = vmatpush1.bf16.msra.mxu1 %v5393_v27  ;;  %v5481_v26 = vld [vmem:[#allocation7 + $0x180] ss:$16 sps:$4 sm:$0xff]   ;;  %v5484_v27 = vld [vmem:[#allocation7 + $0x188] ss:$16 sps:$4 sm:$0xff]  }
  0xf7   :  { %811 = vmatprep.subr.bf16.mxu0 %v5398_v28  ;;  %893 = vmatprep.subr.bf16.mxu1 %v5401_v29  ;;  %v5489_v28 = vld [vmem:[#allocation7 + $0x1a4] ss:$16 sps:$4 sm:$0xff]   ;;  %v5492_v29 = vld [vmem:[#allocation7 + $0x1ac] ss:$16 sps:$4 sm:$0xff]  }
  0xfa   :  { %812 = vmatpush1.bf16.msra.mxu0 %v5396_v30  ;;  %894 = vmatpush1.bf16.msra.mxu1 %v5399_v31  ;;  %v5487_v30 = vld [vmem:[#allocation7 + $0x1a0] ss:$16 sps:$4 sm:$0xff]   ;;  %v5490_v31 = vld [vmem:[#allocation7 + $0x1a8] ss:$16 sps:$4 sm:$0xff]  }
  0xfb   :  { %813 = vmatprep.subr.bf16.mxu0 %v5404_v32  ;;  %895 = vmatprep.subr.bf16.mxu1 %v5407_v33  ;;  %v5495_v32 = vld [vmem:[#allocation7 + $0x1c4] ss:$16 sps:$4 sm:$0xff]   ;;  %v5498_v33 = vld [vmem:[#allocation7 + $0x1cc] ss:$16 sps:$4 sm:$0xff]  }
  0xfe   :  { %814 = vmatpush1.bf16.msra.mxu0 %v5402_v34  ;;  %896 = vmatpush1.bf16.msra.mxu1 %v5405_v35  ;;  %v5493_v34 = vld [vmem:[#allocation7 + $0x1c0] ss:$16 sps:$4 sm:$0xff]   ;;  %v5496_v35 = vld [vmem:[#allocation7 + $0x1c8] ss:$16 sps:$4 sm:$0xff]  }
  0xff   :  { %1514 = vmatprep.subr.bf16.mxu0 %v5411_v36  ;;  %1596 = vmatprep.subr.bf16.mxu1 %v5414_v37  ;;  %v5501_v36 = vld [vmem:[#allocation7 + $0x1e4] ss:$16 sps:$4 sm:$0xff]   ;;  %v5504_v37 = vld [vmem:[#allocation7 + $0x1ec] ss:$16 sps:$4 sm:$0xff]  }
 0x101   :  { %832 = vmatmul.mubr.bf16.vlgmr.msra.gmra.mrb[0].mxu0 %v5408_v38  ;;  %914 = vmatmul.mubr.bf16.vlgmr.msra.gmra.mrb[0].mxu1 %v5408_v38  ;;  %v5499_v38 = vld [vmem:[#allocation7 + $0x1e0] ss:$16 sps:$4 sm:$0xff]  }
 0x102   :  { %1515 = vmatpush1.bf16.msra.mxu0 %v5409_v39  ;;  %1597 = vmatpush1.bf16.msra.mxu1 %v5412_v40  ;;  %v5502_v39 = vld [vmem:[#allocation7 + $0x1e8] ss:$16 sps:$4 sm:$0xff]   ;;  %v5509_v40 = vld [vmem:[#allocation7 + $0x204] ss:$16 sps:$4 sm:$0xff]  }
 0x103   :  { %1516 = vmatprep.subr.bf16.mxu0 %v5417_v41  ;;  %1598 = vmatprep.subr.bf16.mxu1 %v5420_v42  ;;  %v5512_v41 = vld [vmem:[#allocation7 + $0x20c] ss:$16 sps:$4 sm:$0xff]   ;;  %v4658_v42 = vcombine.low %v6531_v53, %v6531_v53  ;;  %v5527_v53 = vld [vmem:[#allocation7 + $0x264] ss:$16 sps:$4 sm:$0xff]  }
 0x104   :  { %1546 = vmatprep.mubr.bf16.mxu0 %v4659_v55  ;;  %1628 = vmatprep.mubr.bf16.mxu1 %v4659_v55  ;;  %v5525_v55 = vld [vmem:[#allocation7 + $0x260] ss:$16 sps:$4 sm:$0xff]  }
 0x106   :  { %1517 = vmatpush1.bf16.msra.mxu0 %v5415_v43  ;;  %1599 = vmatpush1.bf16.msra.mxu1 %v5418_v44  ;;  %v5507_v43 = vld [vmem:[#allocation7 + $0x200] ss:$16 sps:$4 sm:$0xff]   ;;  %v5510_v44 = vld [vmem:[#allocation7 + $0x208] ss:$16 sps:$4 sm:$0xff]  }
 0x107   :  { %1518 = vmatprep.subr.bf16.mxu0 %v5423_v45  ;;  %1600 = vmatprep.subr.bf16.mxu1 %v5426_v46  ;;  %v5515_v45 = vld [vmem:[#allocation7 + $0x224] ss:$16 sps:$4 sm:$0xff]   ;;  %v5518_v46 = vld [vmem:[#allocation7 + $0x22c] ss:$16 sps:$4 sm:$0xff]  }
 0x10a   :  { %1519 = vmatpush1.bf16.msra.mxu0 %v5421_v47  ;;  %1601 = vmatpush1.bf16.msra.mxu1 %v5424_v48  ;;  %v5513_v47 = vld [vmem:[#allocation7 + $0x220] ss:$16 sps:$4 sm:$0xff]   ;;  %v5516_v48 = vld [vmem:[#allocation7 + $0x228] ss:$16 sps:$4 sm:$0xff]  }
 0x10b   :  { %1520 = vmatprep.subr.bf16.mxu0 %v5429_v49  ;;  %1602 = vmatprep.subr.bf16.mxu1 %v5432_v50  ;;  %v5521_v49 = vld [vmem:[#allocation7 + $0x244] ss:$16 sps:$4 sm:$0xff]   ;;  %v5524_v50 = vld [vmem:[#allocation7 + $0x24c] ss:$16 sps:$4 sm:$0xff]  }
 0x10e   :  { %1521 = vmatpush1.bf16.msra.mxu0 %v5427_v51  ;;  %1603 = vmatpush1.bf16.msra.mxu1 %v5430_v52  ;;  %v5519_v51 = vld [vmem:[#allocation7 + $0x240] ss:$16 sps:$4 sm:$0xff]   ;;  %v5522_v52 = vld [vmem:[#allocation7 + $0x248] ss:$16 sps:$4 sm:$0xff]  }
 0x10f   :  { %1522 = vmatprep.subr.bf16.mxu0 %v5435_v54  ;;  %1604 = vmatprep.subr.bf16.mxu1 %v5438_v56  ;;  %v5530_v54 = vld [vmem:[#allocation7 + $0x26c] ss:$16 sps:$4 sm:$0xff]   ;;  %v5528_v56 = vld [vmem:[#allocation7 + $0x268] ss:$16 sps:$4 sm:$0xff]  }
 0x112   :  { %1523 = vmatpush1.bf16.msra.mxu0 %v5433_v57  ;;  %1605 = vmatpush1.bf16.msra.mxu1 %v5436_v58  ;;  %v5533_v57 = vld [vmem:[#allocation7 + $0x284] ss:$16 sps:$4 sm:$0xff]   ;;  %v5536_v58 = vld [vmem:[#allocation7 + $0x28c] ss:$16 sps:$4 sm:$0xff]  }
 0x113   :  { %1524 = vmatprep.subr.bf16.mxu0 %v5441_v59  ;;  %1606 = vmatprep.subr.bf16.mxu1 %v5444_v60  ;;  %v5531_v59 = vld [vmem:[#allocation7 + $0x280] ss:$16 sps:$4 sm:$0xff]   ;;  %v5534_v60 = vld [vmem:[#allocation7 + $0x288] ss:$16 sps:$4 sm:$0xff]  }
 0x116   :  { %1525 = vmatpush1.bf16.msra.mxu0 %v5439_v61  ;;  %1607 = vmatpush1.bf16.msra.mxu1 %v5442_v62  ;;  %v5539_v61 = vld [vmem:[#allocation7 + $0x2a4] ss:$16 sps:$4 sm:$0xff]   ;;  %v5542_v62 = vld [vmem:[#allocation7 + $0x2ac] ss:$16 sps:$4 sm:$0xff]  }
 0x117   :  { %1526 = vmatprep.subr.bf16.mxu0 %v5447_v63  ;;  %1608 = vmatprep.subr.bf16.mxu1 %v5450_v0  ;;  %v5537_v63 = vld [vmem:[#allocation7 + $0x2a0] ss:$16 sps:$4 sm:$0xff]   ;;  %v5540_v0 = vld [vmem:[#allocation7 + $0x2a8] ss:$16 sps:$4 sm:$0xff]  }
 0x11a   :  { %1527 = vmatpush1.bf16.msra.mxu0 %v5445_v1  ;;  %1609 = vmatpush1.bf16.msra.mxu1 %v5448_v2  ;;  %v5545_v1 = vld [vmem:[#allocation7 + $0x2c4] ss:$16 sps:$4 sm:$0xff]   ;;  %v5548_v2 = vld [vmem:[#allocation7 + $0x2cc] ss:$16 sps:$4 sm:$0xff]  }
 0x11b   :  { %1528 = vmatprep.subr.bf16.mxu0 %v5453_v3  ;;  %1610 = vmatprep.subr.bf16.mxu1 %v5456_v4  ;;  %v5543_v3 = vld [vmem:[#allocation7 + $0x2c0] ss:$16 sps:$4 sm:$0xff]   ;;  %v5546_v4 = vld [vmem:[#allocation7 + $0x2c8] ss:$16 sps:$4 sm:$0xff]  }
 0x11e   :  { %1529 = vmatpush1.bf16.msra.mxu0 %v5451_v5  ;;  %1611 = vmatpush1.bf16.msra.mxu1 %v5454_v6  ;;  %v5551_v5 = vld [vmem:[#allocation7 + $0x2e4] ss:$16 sps:$4 sm:$0xff]   ;;  %v5554_v6 = vld [vmem:[#allocation7 + $0x2ec] ss:$16 sps:$4 sm:$0xff]  }
 0x11f   :  { %1530 = vmatprep.subr.bf16.mxu0 %v5459_v7  ;;  %1612 = vmatprep.subr.bf16.mxu1 %v5462_v8  ;;  %v5549_v7 = vld [vmem:[#allocation7 + $0x2e0] ss:$16 sps:$4 sm:$0xff]   ;;  %v5552_v8 = vld [vmem:[#allocation7 + $0x2e8] ss:$16 sps:$4 sm:$0xff]  }
 0x122   :  { %1531 = vmatpush1.bf16.msra.mxu0 %v5457_v9  ;;  %1613 = vmatpush1.bf16.msra.mxu1 %v5460_v10  ;;  %v5558_v9 = vld [vmem:[#allocation8 + $0x4] ss:$16 sps:$4 sm:$0xff]   ;;  %v5561_v10 = vld [vmem:[#allocation8 + $0xc] ss:$16 sps:$4 sm:$0xff]  }
 0x123   :  { %1532 = vmatprep.subr.bf16.mxu0 %v5465_v11  ;;  %1614 = vmatprep.subr.bf16.mxu1 %v5468_v12  ;;  %v5555_v11 = vld [vmem:[#allocation2 + $0xc] ss:$0 sps:$4 sm:$0xff]  }
 0x124   :  { %v5556_v12 = vld [vmem:[#allocation8] ss:$16 sps:$4 sm:$0xff]  }
 0x126   :  { %1533 = vmatpush1.bf16.msra.mxu0 %v5463_v14  ;;  %1615 = vmatpush1.bf16.msra.mxu1 %v5466_v15  ;;  %v6539_v14 = vld [vmem:[#allocation2 + $0x8] sm:$0xff]  ;;  %v5559_v15 = vld [vmem:[#allocation8 + $0x8] ss:$16 sps:$4 sm:$0xff]  }
 0x127   :  { %1534 = vmatprep.subr.bf16.mxu0 %v5471_v16  ;;  %1616 = vmatprep.subr.bf16.mxu1 %v5474_v17  ;;  %v5564_v16 = vld [vmem:[#allocation8 + $0x24] ss:$16 sps:$4 sm:$0xff]   ;;  %v5567_v17 = vld [vmem:[#allocation8 + $0x2c] ss:$16 sps:$4 sm:$0xff]  }
 0x12a   :  { %1535 = vmatpush1.bf16.msra.mxu0 %v5469_v18  ;;  %1617 = vmatpush1.bf16.msra.mxu1 %v5472_v19  ;;  %v4758_v18 = vcombine.high %v6539_v14, %v6539_v14  ;;  %v5562_v19 = vld [vmem:[#allocation8 + $0x20] ss:$16 sps:$4 sm:$0xff]  }
 0x12b   :  { %1536 = vmatprep.subr.bf16.mxu0 %v5477_v20  ;;  %1618 = vmatprep.subr.bf16.mxu1 %v5480_v21  ;;  %v5565_v20 = vld [vmem:[#allocation8 + $0x28] ss:$16 sps:$4 sm:$0xff]   ;;  %v5570_v21 = vld [vmem:[#allocation8 + $0x44] ss:$16 sps:$4 sm:$0xff]  }
 0x12e   :  { %1537 = vmatpush1.bf16.msra.mxu0 %v5475_v22  ;;  %1619 = vmatpush1.bf16.msra.mxu1 %v5478_v23  ;;  %v5573_v22 = vld [vmem:[#allocation8 + $0x4c] ss:$16 sps:$4 sm:$0xff]   ;;  %v5568_v23 = vld [vmem:[#allocation8 + $0x40] ss:$16 sps:$4 sm:$0xff]  }
 0x12f   :  { %1538 = vmatprep.subr.bf16.mxu0 %v5483_v24  ;;  %1620 = vmatprep.subr.bf16.mxu1 %v5486_v25  ;;  %v5571_v24 = vld [vmem:[#allocation8 + $0x48] ss:$16 sps:$4 sm:$0xff]   ;;  %v5576_v25 = vld [vmem:[#allocation8 + $0x64] ss:$16 sps:$4 sm:$0xff]  }
 0x132   :  { %1539 = vmatpush1.bf16.msra.mxu0 %v5481_v26  ;;  %1621 = vmatpush1.bf16.msra.mxu1 %v5484_v27  ;;  %v5579_v26 = vld [vmem:[#allocation8 + $0x6c] ss:$16 sps:$4 sm:$0xff]   ;;  %v5574_v27 = vld [vmem:[#allocation8 + $0x60] ss:$16 sps:$4 sm:$0xff]  }
 0x133   :  { %1540 = vmatprep.subr.bf16.mxu0 %v5489_v28  ;;  %1622 = vmatprep.subr.bf16.mxu1 %v5492_v29  ;;  %v5577_v28 = vld [vmem:[#allocation8 + $0x68] ss:$16 sps:$4 sm:$0xff]   ;;  %v5582_v29 = vld [vmem:[#allocation8 + $0x84] ss:$16 sps:$4 sm:$0xff]  }
 0x136   :  { %1541 = vmatpush1.bf16.msra.mxu0 %v5487_v30  ;;  %1623 = vmatpush1.bf16.msra.mxu1 %v5490_v31  ;;  %v5585_v30 = vld [vmem:[#allocation8 + $0x8c] ss:$16 sps:$4 sm:$0xff]   ;;  %v5580_v31 = vld [vmem:[#allocation8 + $0x80] ss:$16 sps:$4 sm:$0xff]  }
 0x137   :  { %1542 = vmatprep.subr.bf16.mxu0 %v5495_v32  ;;  %1624 = vmatprep.subr.bf16.mxu1 %v5498_v33  ;;  %v5583_v32 = vld [vmem:[#allocation8 + $0x88] ss:$16 sps:$4 sm:$0xff]   ;;  %v5588_v33 = vld [vmem:[#allocation8 + $0xa4] ss:$16 sps:$4 sm:$0xff]  }
 0x13a   :  { %1543 = vmatpush1.bf16.msra.mxu0 %v5493_v34  ;;  %1625 = vmatpush1.bf16.msra.mxu1 %v5496_v35  ;;  %v5591_v34 = vld [vmem:[#allocation8 + $0xac] ss:$16 sps:$4 sm:$0xff]   ;;  %v5586_v35 = vld [vmem:[#allocation8 + $0xa0] ss:$16 sps:$4 sm:$0xff]  }
 0x13b   :  { %1544 = vmatprep.subr.bf16.mxu0 %v5501_v36  ;;  %1626 = vmatprep.subr.bf16.mxu1 %v5504_v37  ;;  %v5589_v36 = vld [vmem:[#allocation8 + $0xa8] ss:$16 sps:$4 sm:$0xff]   ;;  %v5594_v37 = vld [vmem:[#allocation8 + $0xc4] ss:$16 sps:$4 sm:$0xff]  }
 0x13e   :  { %1545 = vmatpush1.bf16.msra.mxu0 %v5499_v38  ;;  %1627 = vmatpush1.bf16.msra.mxu1 %v5502_v39  ;;  %v5597_v38 = vld [vmem:[#allocation8 + $0xcc] ss:$16 sps:$4 sm:$0xff]   ;;  %v5592_v39 = vld [vmem:[#allocation8 + $0xc0] ss:$16 sps:$4 sm:$0xff]  }
 0x13f   :  { %1555 = vmatprep.subr.bf16.mxu0 %v5509_v40  ;;  %1637 = vmatprep.subr.bf16.mxu1 %v5512_v41  ;;  %v5595_v40 = vld [vmem:[#allocation8 + $0xc8] ss:$16 sps:$4 sm:$0xff]   ;;  %v5600_v41 = vld [vmem:[#allocation8 + $0xe4] ss:$16 sps:$4 sm:$0xff]  }
 0x141   :  { %1547 = vmatmul.mubr.bf16.vlgmr.msra.gmra.mrb[4].mxu0 %v4658_v42  ;;  %1629 = vmatmul.mubr.bf16.vlgmr.msra.gmra.mrb[4].mxu1 %v4658_v42  ;;  %v5603_v42 = vld [vmem:[#allocation8 + $0xec] ss:$16 sps:$4 sm:$0xff]  }
 0x142   :  { %1556 = vmatpush1.bf16.msra.mxu0 %v5507_v43  ;;  %1638 = vmatpush1.bf16.msra.mxu1 %v5510_v44  ;;  %v5598_v43 = vld [vmem:[#allocation8 + $0xe0] ss:$16 sps:$4 sm:$0xff]   ;;  %v5601_v44 = vld [vmem:[#allocation8 + $0xe8] ss:$16 sps:$4 sm:$0xff]  }
 0x143   :  { %1557 = vmatprep.subr.bf16.mxu0 %v5515_v45  ;;  %1639 = vmatprep.subr.bf16.mxu1 %v5518_v46  ;;  %v5606_v45 = vld [vmem:[#allocation8 + $0x104] ss:$16 sps:$4 sm:$0xff]   ;;  %v5609_v46 = vld [vmem:[#allocation8 + $0x10c] ss:$16 sps:$4 sm:$0xff]  }
 0x144   :  { %1587 = vmatprep.mubr.bf16.mxu0 %v6318_v13  ;;  %1669 = vmatprep.mubr.bf16.mxu1 %v6318_v13 }
 0x146   :  { %1558 = vmatpush1.bf16.msra.mxu0 %v5513_v47  ;;  %1640 = vmatpush1.bf16.msra.mxu1 %v5516_v48  ;;  %v5604_v47 = vld [vmem:[#allocation8 + $0x100] ss:$16 sps:$4 sm:$0xff]   ;;  %v5607_v48 = vld [vmem:[#allocation8 + $0x108] ss:$16 sps:$4 sm:$0xff]  }
 0x147   :  { %1559 = vmatprep.subr.bf16.mxu0 %v5521_v49  ;;  %1641 = vmatprep.subr.bf16.mxu1 %v5524_v50  ;;  %v5612_v49 = vld [vmem:[#allocation8 + $0x124] ss:$16 sps:$4 sm:$0xff]   ;;  %v5615_v50 = vld [vmem:[#allocation8 + $0x12c] ss:$16 sps:$4 sm:$0xff]  }
 0x14a   :  { %1560 = vmatpush1.bf16.msra.mxu0 %v5519_v51  ;;  %1642 = vmatpush1.bf16.msra.mxu1 %v5522_v52  ;;  %v5610_v51 = vld [vmem:[#allocation8 + $0x120] ss:$16 sps:$4 sm:$0xff]   ;;  %v5613_v52 = vld [vmem:[#allocation8 + $0x128] ss:$16 sps:$4 sm:$0xff]  }
 0x14b   :  { %1561 = vmatprep.subr.bf16.mxu0 %v5527_v53  ;;  %1643 = vmatprep.subr.bf16.mxu1 %v5530_v54  ;;  %v5618_v53 = vld [vmem:[#allocation8 + $0x144] ss:$16 sps:$4 sm:$0xff]   ;;  %v5621_v54 = vld [vmem:[#allocation8 + $0x14c] ss:$16 sps:$4 sm:$0xff]  }
 0x14e   :  { %1562 = vmatpush1.bf16.msra.mxu0 %v5525_v55  ;;  %1644 = vmatpush1.bf16.msra.mxu1 %v5528_v56  ;;  %v5616_v55 = vld [vmem:[#allocation8 + $0x140] ss:$16 sps:$4 sm:$0xff]   ;;  %v5619_v56 = vld [vmem:[#allocation8 + $0x148] ss:$16 sps:$4 sm:$0xff]  }
 0x14f   :  { %1563 = vmatprep.subr.bf16.mxu0 %v5533_v57  ;;  %1645 = vmatprep.subr.bf16.mxu1 %v5536_v58  ;;  %v5624_v57 = vld [vmem:[#allocation8 + $0x164] ss:$16 sps:$4 sm:$0xff]   ;;  %v5627_v58 = vld [vmem:[#allocation8 + $0x16c] ss:$16 sps:$4 sm:$0xff]  }
 0x152   :  { %1564 = vmatpush1.bf16.msra.mxu0 %v5531_v59  ;;  %1646 = vmatpush1.bf16.msra.mxu1 %v5534_v60  ;;  %v5622_v59 = vld [vmem:[#allocation8 + $0x160] ss:$16 sps:$4 sm:$0xff]   ;;  %v5625_v60 = vld [vmem:[#allocation8 + $0x168] ss:$16 sps:$4 sm:$0xff]  }
 0x153   :  { %1565 = vmatprep.subr.bf16.mxu0 %v5539_v61  ;;  %1647 = vmatprep.subr.bf16.mxu1 %v5542_v62  ;;  %v5630_v61 = vld [vmem:[#allocation8 + $0x184] ss:$16 sps:$4 sm:$0xff]   ;;  %v5633_v62 = vld [vmem:[#allocation8 + $0x18c] ss:$16 sps:$4 sm:$0xff]  }
 0x156   :  { %1566 = vmatpush1.bf16.msra.mxu0 %v5537_v63  ;;  %1648 = vmatpush1.bf16.msra.mxu1 %v5540_v0  ;;  %v5628_v63 = vld [vmem:[#allocation8 + $0x180] ss:$16 sps:$4 sm:$0xff]   ;;  %v5631_v0 = vld [vmem:[#allocation8 + $0x188] ss:$16 sps:$4 sm:$0xff]  }
 0x157   :  { %1567 = vmatprep.subr.bf16.mxu0 %v5545_v1  ;;  %1649 = vmatprep.subr.bf16.mxu1 %v5548_v2  ;;  %v5636_v1 = vld [vmem:[#allocation8 + $0x1a4] ss:$16 sps:$4 sm:$0xff]   ;;  %v5639_v2 = vld [vmem:[#allocation8 + $0x1ac] ss:$16 sps:$4 sm:$0xff]  }
 0x15a   :  { %1568 = vmatpush1.bf16.msra.mxu0 %v5543_v3  ;;  %1650 = vmatpush1.bf16.msra.mxu1 %v5546_v4  ;;  %v5634_v3 = vld [vmem:[#allocation8 + $0x1a0] ss:$16 sps:$4 sm:$0xff]   ;;  %v5637_v4 = vld [vmem:[#allocation8 + $0x1a8] ss:$16 sps:$4 sm:$0xff]  }
 0x15b   :  { %1569 = vmatprep.subr.bf16.mxu0 %v5551_v5  ;;  %1651 = vmatprep.subr.bf16.mxu1 %v5554_v6  ;;  %v5642_v5 = vld [vmem:[#allocation8 + $0x1c4] ss:$16 sps:$4 sm:$0xff]   ;;  %v5645_v6 = vld [vmem:[#allocation8 + $0x1cc] ss:$16 sps:$4 sm:$0xff]  }
 0x15e   :  { %1570 = vmatpush1.bf16.msra.mxu0 %v5549_v7  ;;  %1652 = vmatpush1.bf16.msra.mxu1 %v5552_v8  ;;  %v5640_v7 = vld [vmem:[#allocation8 + $0x1c0] ss:$16 sps:$4 sm:$0xff]   ;;  %v5643_v8 = vld [vmem:[#allocation8 + $0x1c8] ss:$16 sps:$4 sm:$0xff]  }
 0x15f   :  { %2270 = vmatprep.subr.bf16.mxu0 %v5558_v9  ;;  %2352 = vmatprep.subr.bf16.mxu1 %v5561_v10  ;;  %v5648_v9 = vld [vmem:[#allocation8 + $0x1e4] ss:$16 sps:$4 sm:$0xff]   ;;  %v5651_v10 = vld [vmem:[#allocation8 + $0x1ec] ss:$16 sps:$4 sm:$0xff]  }
 0x161   :  { %1588 = vmatmul.mubr.bf16.vlgmr.msra.gmra.mrb[4].mxu0 %v5555_v11  ;;  %1670 = vmatmul.mubr.bf16.vlgmr.msra.gmra.mrb[4].mxu1 %v5555_v11  ;;  %v5646_v11 = vld [vmem:[#allocation8 + $0x1e0] ss:$16 sps:$4 sm:$0xff]  }
 0x162   :  { %2271 = vmatpush1.bf16.msra.mxu0 %v5556_v12  ;;  %2353 = vmatpush1.bf16.msra.mxu1 %v5559_v15  ;;  %v5649_v12 = vld [vmem:[#allocation8 + $0x1e8] ss:$16 sps:$4 sm:$0xff]   ;;  %v5656_v15 = vld [vmem:[#allocation8 + $0x204] ss:$16 sps:$4 sm:$0xff]  }
 0x163   :  { %2272 = vmatprep.subr.bf16.mxu0 %v5564_v16  ;;  %2354 = vmatprep.subr.bf16.mxu1 %v5567_v17  ;;  %v5659_v16 = vld [vmem:[#allocation8 + $0x20c] ss:$16 sps:$4 sm:$0xff]   ;;  %v4757_v17 = vcombine.low %v6539_v14, %v6539_v14  ;;  %v5666_v14 = vld [vmem:[#allocation8 + $0x240] ss:$16 sps:$4 sm:$0xff]  }
 0x164   :  { %2302 = vmatprep.mubr.bf16.mxu0 %v4758_v18  ;;  %2384 = vmatprep.mubr.bf16.mxu1 %v4758_v18  ;;  %v5654_v18 = vld [vmem:[#allocation8 + $0x200] ss:$16 sps:$4 sm:$0xff]  }
 0x166   :  { %2273 = vmatpush1.bf16.msra.mxu0 %v5562_v19  ;;  %2355 = vmatpush1.bf16.msra.mxu1 %v5565_v20  ;;  %v5657_v19 = vld [vmem:[#allocation8 + $0x208] ss:$16 sps:$4 sm:$0xff]   ;;  %v5662_v20 = vld [vmem:[#allocation8 + $0x224] ss:$16 sps:$4 sm:$0xff]  }
 0x167   :  { %2274 = vmatprep.subr.bf16.mxu0 %v5570_v21  ;;  %2356 = vmatprep.subr.bf16.mxu1 %v5573_v22  ;;  %v5665_v21 = vld [vmem:[#allocation8 + $0x22c] ss:$16 sps:$4 sm:$0xff]   ;;  %v5660_v22 = vld [vmem:[#allocation8 + $0x220] ss:$16 sps:$4 sm:$0xff]  }
 0x16a   :  { %2275 = vmatpush1.bf16.msra.mxu0 %v5568_v23  ;;  %2357 = vmatpush1.bf16.msra.mxu1 %v5571_v24  ;;  %v5663_v23 = vld [vmem:[#allocation8 + $0x228] ss:$16 sps:$4 sm:$0xff]   ;;  %v5668_v24 = vld [vmem:[#allocation8 + $0x244] ss:$16 sps:$4 sm:$0xff]  }
 0x16b   :  { %2276 = vmatprep.subr.bf16.mxu0 %v5576_v25  ;;  %2358 = vmatprep.subr.bf16.mxu1 %v5579_v26  ;;  %v5671_v25 = vld [vmem:[#allocation8 + $0x24c] ss:$16 sps:$4 sm:$0xff]   ;;  %v5669_v26 = vld [vmem:[#allocation8 + $0x248] ss:$16 sps:$4 sm:$0xff]  }
 0x16e   :  { %2277 = vmatpush1.bf16.msra.mxu0 %v5574_v27  ;;  %2359 = vmatpush1.bf16.msra.mxu1 %v5577_v28  ;;  %v5674_v27 = vld [vmem:[#allocation8 + $0x264] ss:$16 sps:$4 sm:$0xff]   ;;  %v5677_v28 = vld [vmem:[#allocation8 + $0x26c] ss:$16 sps:$4 sm:$0xff]  }
 0x16f   :  { %2278 = vmatprep.subr.bf16.mxu0 %v5582_v29  ;;  %2360 = vmatprep.subr.bf16.mxu1 %v5585_v30  ;;  %v5672_v29 = vld [vmem:[#allocation8 + $0x260] ss:$16 sps:$4 sm:$0xff]   ;;  %v5675_v30 = vld [vmem:[#allocation8 + $0x268] ss:$16 sps:$4 sm:$0xff]  }
 0x172   :  { %2279 = vmatpush1.bf16.msra.mxu0 %v5580_v31  ;;  %2361 = vmatpush1.bf16.msra.mxu1 %v5583_v32  ;;  %v5680_v31 = vld [vmem:[#allocation8 + $0x284] ss:$16 sps:$4 sm:$0xff]   ;;  %v5683_v32 = vld [vmem:[#allocation8 + $0x28c] ss:$16 sps:$4 sm:$0xff]  }
 0x173   :  { %2280 = vmatprep.subr.bf16.mxu0 %v5588_v33  ;;  %2362 = vmatprep.subr.bf16.mxu1 %v5591_v34  ;;  %v5678_v33 = vld [vmem:[#allocation8 + $0x280] ss:$16 sps:$4 sm:$0xff]   ;;  %v5686_v34 = vld [vmem:[#allocation8 + $0x2a4] ss:$16 sps:$4 sm:$0xff]  }
 0x176   :  { %2281 = vmatpush1.bf16.msra.mxu0 %v5586_v35  ;;  %2363 = vmatpush1.bf16.msra.mxu1 %v5589_v36  ;;  %v5689_v35 = vld [vmem:[#allocation8 + $0x2ac] ss:$16 sps:$4 sm:$0xff]   ;;  %v5684_v36 = vld [vmem:[#allocation8 + $0x2a0] ss:$16 sps:$4 sm:$0xff]  }
 0x177   :  { %2282 = vmatprep.subr.bf16.mxu0 %v5594_v37  ;;  %2364 = vmatprep.subr.bf16.mxu1 %v5597_v38  ;;  %v5687_v37 = vld [vmem:[#allocation8 + $0x2a8] ss:$16 sps:$4 sm:$0xff]   ;;  %v5692_v38 = vld [vmem:[#allocation8 + $0x2c4] ss:$16 sps:$4 sm:$0xff]  }
 0x17a   :  { %2283 = vmatpush1.bf16.msra.mxu0 %v5592_v39  ;;  %2365 = vmatpush1.bf16.msra.mxu1 %v5595_v40  ;;  %v5695_v39 = vld [vmem:[#allocation8 + $0x2cc] ss:$16 sps:$4 sm:$0xff]   ;;  %v5690_v40 = vld [vmem:[#allocation8 + $0x2c0] ss:$16 sps:$4 sm:$0xff]  }
 0x17b   :  { %2284 = vmatprep.subr.bf16.mxu0 %v5600_v41  ;;  %2366 = vmatprep.subr.bf16.mxu1 %v5603_v42  ;;  %v5693_v41 = vld [vmem:[#allocation8 + $0x2c8] ss:$16 sps:$4 sm:$0xff]   ;;  %v5698_v42 = vld [vmem:[#allocation8 + $0x2e4] ss:$16 sps:$4 sm:$0xff]  }
 0x17e   :  { %2285 = vmatpush1.bf16.msra.mxu0 %v5598_v43  ;;  %2367 = vmatpush1.bf16.msra.mxu1 %v5601_v44  ;;  %v5701_v43 = vld [vmem:[#allocation8 + $0x2ec] ss:$16 sps:$4 sm:$0xff]   ;;  %v5696_v44 = vld [vmem:[#allocation8 + $0x2e0] ss:$16 sps:$4 sm:$0xff]  }
 0x17f   :  { %2286 = vmatprep.subr.bf16.mxu0 %v5606_v45  ;;  %2368 = vmatprep.subr.bf16.mxu1 %v5609_v46  ;;  %v5699_v45 = vld [vmem:[#allocation8 + $0x2e8] ss:$16 sps:$4 sm:$0xff]   ;;  %v5705_v46 = vld [vmem:[#allocation10 + $0x4] ss:$16 sps:$4 sm:$0xff]  }
 0x182   :  { %2287 = vmatpush1.bf16.msra.mxu0 %v5604_v47  ;;  %2369 = vmatpush1.bf16.msra.mxu1 %v5607_v48  ;;  %v5702_v47 = vld [vmem:[#allocation2 + $0x10] ss:$0 sps:$4 sm:$0xff]   ;;  %v5708_v48 = vld [vmem:[#allocation10 + $0xc] ss:$16 sps:$4 sm:$0xff]  }
 0x183   :  { %2288 = vmatprep.subr.bf16.mxu0 %v5612_v49  ;;  %2370 = vmatprep.subr.bf16.mxu1 %v5615_v50  ;;  %v6547_v49 = vld [vmem:[#allocation2 + $0xc] sm:$0xff] }
 0x184   :  { %v5703_v50 = vld [vmem:[#allocation10] ss:$16 sps:$4 sm:$0xff]  }
 0x186   :  { %2289 = vmatpush1.bf16.msra.mxu0 %v5610_v51  ;;  %2371 = vmatpush1.bf16.msra.mxu1 %v5613_v52  ;;  %v5706_v51 = vld [vmem:[#allocation10 + $0x8] ss:$16 sps:$4 sm:$0xff]   ;;  %v5711_v52 = vld [vmem:[#allocation10 + $0x24] ss:$16 sps:$4 sm:$0xff]  }
 0x187   :  { %2290 = vmatprep.subr.bf16.mxu0 %v5618_v53  ;;  %2372 = vmatprep.subr.bf16.mxu1 %v5621_v54  ;;  %v5714_v53 = vld [vmem:[#allocation10 + $0x2c] ss:$16 sps:$4 sm:$0xff]   ;;  %v4857_v54 = vcombine.high %v6547_v49, %v6547_v49 }
 0x18a   :  { %2291 = vmatpush1.bf16.msra.mxu0 %v5616_v55  ;;  %2373 = vmatpush1.bf16.msra.mxu1 %v5619_v56  ;;  %v5709_v55 = vld [vmem:[#allocation10 + $0x20] ss:$16 sps:$4 sm:$0xff]   ;;  %v5712_v56 = vld [vmem:[#allocation10 + $0x28] ss:$16 sps:$4 sm:$0xff]  }
 0x18b   :  { %2292 = vmatprep.subr.bf16.mxu0 %v5624_v57  ;;  %2374 = vmatprep.subr.bf16.mxu1 %v5627_v58  ;;  %v5717_v57 = vld [vmem:[#allocation10 + $0x44] ss:$16 sps:$4 sm:$0xff]   ;;  %v5720_v58 = vld [vmem:[#allocation10 + $0x4c] ss:$16 sps:$4 sm:$0xff]  }
 0x18e   :  { %2293 = vmatpush1.bf16.msra.mxu0 %v5622_v59  ;;  %2375 = vmatpush1.bf16.msra.mxu1 %v5625_v60  ;;  %v5715_v59 = vld [vmem:[#allocation10 + $0x40] ss:$16 sps:$4 sm:$0xff]   ;;  %v5718_v60 = vld [vmem:[#allocation10 + $0x48] ss:$16 sps:$4 sm:$0xff]  }
 0x18f   :  { %2294 = vmatprep.subr.bf16.mxu0 %v5630_v61  ;;  %2376 = vmatprep.subr.bf16.mxu1 %v5633_v62  ;;  %v5723_v61 = vld [vmem:[#allocation10 + $0x64] ss:$16 sps:$4 sm:$0xff]   ;;  %v5726_v62 = vld [vmem:[#allocation10 + $0x6c] ss:$16 sps:$4 sm:$0xff]  }
 0x192   :  { %2295 = vmatpush1.bf16.msra.mxu0 %v5628_v63  ;;  %2377 = vmatpush1.bf16.msra.mxu1 %v5631_v0  ;;  %v5721_v63 = vld [vmem:[#allocation10 + $0x60] ss:$16 sps:$4 sm:$0xff]   ;;  %v5724_v0 = vld [vmem:[#allocation10 + $0x68] ss:$16 sps:$4 sm:$0xff]  }
 0x193   :  { %2296 = vmatprep.subr.bf16.mxu0 %v5636_v1  ;;  %2378 = vmatprep.subr.bf16.mxu1 %v5639_v2  ;;  %v5729_v1 = vld [vmem:[#allocation10 + $0x84] ss:$16 sps:$4 sm:$0xff]   ;;  %v5732_v2 = vld [vmem:[#allocation10 + $0x8c] ss:$16 sps:$4 sm:$0xff]  }
 0x196   :  { %2297 = vmatpush1.bf16.msra.mxu0 %v5634_v3  ;;  %2379 = vmatpush1.bf16.msra.mxu1 %v5637_v4  ;;  %v5727_v3 = vld [vmem:[#allocation10 + $0x80] ss:$16 sps:$4 sm:$0xff]   ;;  %v5730_v4 = vld [vmem:[#allocation10 + $0x88] ss:$16 sps:$4 sm:$0xff]  }
 0x197   :  { %2298 = vmatprep.subr.bf16.mxu0 %v5642_v5  ;;  %2380 = vmatprep.subr.bf16.mxu1 %v5645_v6  ;;  %v5735_v5 = vld [vmem:[#allocation10 + $0xa4] ss:$16 sps:$4 sm:$0xff]   ;;  %v5738_v6 = vld [vmem:[#allocation10 + $0xac] ss:$16 sps:$4 sm:$0xff]  }
 0x19a   :  { %2299 = vmatpush1.bf16.msra.mxu0 %v5640_v7  ;;  %2381 = vmatpush1.bf16.msra.mxu1 %v5643_v8  ;;  %v5733_v7 = vld [vmem:[#allocation10 + $0xa0] ss:$16 sps:$4 sm:$0xff]   ;;  %v5736_v8 = vld [vmem:[#allocation10 + $0xa8] ss:$16 sps:$4 sm:$0xff]  }
 0x19b   :  { %2300 = vmatprep.subr.bf16.mxu0 %v5648_v9  ;;  %2382 = vmatprep.subr.bf16.mxu1 %v5651_v10  ;;  %v5741_v9 = vld [vmem:[#allocation10 + $0xc4] ss:$16 sps:$4 sm:$0xff]   ;;  %v5744_v10 = vld [vmem:[#allocation10 + $0xcc] ss:$16 sps:$4 sm:$0xff]  }
 0x19e   :  { %2301 = vmatpush1.bf16.msra.mxu0 %v5646_v11  ;;  %2383 = vmatpush1.bf16.msra.mxu1 %v5649_v12 }
 0x19f   :  { %2311 = vmatprep.subr.bf16.mxu0 %v5656_v15  ;;  %2393 = vmatprep.subr.bf16.mxu1 %v5659_v16 }
 0x1a1   :  { %2303 = vmatmul.mubr.bf16.vlgmr.msra.gmra.mrb[8].mxu0 %v4757_v17  ;;  %2385 = vmatmul.mubr.bf16.vlgmr.msra.gmra.mrb[8].mxu1 %v4757_v17 }
 0x1a2   :  { %2312 = vmatpush1.bf16.msra.mxu0 %v5654_v18  ;;  %2394 = vmatpush1.bf16.msra.mxu1 %v5657_v19 }
 0x1a3   :  { %2313 = vmatprep.subr.bf16.mxu0 %v5662_v20  ;;  %2395 = vmatprep.subr.bf16.mxu1 %v5665_v21  ;;  %v5739_v21 = vld [vmem:[#allocation10 + $0xc0] ss:$16 sps:$4 sm:$0xff]  }
 0x1a4   :  { %2343 = vmatprep.mubr.bf16.mxu0 %v6318_v13  ;;  %2425 = vmatprep.mubr.bf16.mxu1 %v6318_v13  ;;  %v5681_v13 = vld [vmem:[#allocation8 + $0x288] ss:$16 sps:$4 sm:$0xff]  }
 0x1a6   :  { %2314 = vmatpush1.bf16.msra.mxu0 %v5660_v22  ;;  %2396 = vmatpush1.bf16.msra.mxu1 %v5663_v23  ;;  %v5742_v22 = vld [vmem:[#allocation10 + $0xc8] ss:$16 sps:$4 sm:$0xff]  }
 0x1a7   :  { %2315 = vmatprep.subr.bf16.mxu0 %v5668_v24  ;;  %2397 = vmatprep.subr.bf16.mxu1 %v5671_v25  ;;  %v5747_v25 = vld [vmem:[#allocation10 + $0xe4] ss:$16 sps:$4 sm:$0xff]  }
 0x1aa   :  { %2316 = vmatpush1.bf16.msra.mxu0 %v5666_v14  ;;  %2398 = vmatpush1.bf16.msra.mxu1 %v5669_v26  ;;  %v5750_v14 = vld [vmem:[#allocation10 + $0xec] ss:$16 sps:$4 sm:$0xff]  }
 0x1ab   :  { %2317 = vmatprep.subr.bf16.mxu0 %v5674_v27  ;;  %2399 = vmatprep.subr.bf16.mxu1 %v5677_v28  ;;  %v5745_v27 = vld [vmem:[#allocation10 + $0xe0] ss:$16 sps:$4 sm:$0xff]   ;;  %v5748_v28 = vld [vmem:[#allocation10 + $0xe8] ss:$16 sps:$4 sm:$0xff]  }
 0x1ae   :  { %2318 = vmatpush1.bf16.msra.mxu0 %v5672_v29  ;;  %2400 = vmatpush1.bf16.msra.mxu1 %v5675_v30  ;;  %v5753_v29 = vld [vmem:[#allocation10 + $0x104] ss:$16 sps:$4 sm:$0xff]   ;;  %v5756_v30 = vld [vmem:[#allocation10 + $0x10c] ss:$16 sps:$4 sm:$0xff]  }
 0x1af   :  { %2319 = vmatprep.subr.bf16.mxu0 %v5680_v31  ;;  %2401 = vmatprep.subr.bf16.mxu1 %v5683_v32  ;;  %v5751_v31 = vld [vmem:[#allocation10 + $0x100] ss:$16 sps:$4 sm:$0xff]   ;;  %v5754_v32 = vld [vmem:[#allocation10 + $0x108] ss:$16 sps:$4 sm:$0xff]  }
 0x1b2   :  { %2320 = vmatpush1.bf16.msra.mxu0 %v5678_v33  ;;  %2402 = vmatpush1.bf16.msra.mxu1 %v5681_v13  ;;  %v5759_v33 = vld [vmem:[#allocation10 + $0x124] ss:$16 sps:$4 sm:$0xff]   ;;  %v5762_v13 = vld [vmem:[#allocation10 + $0x12c] ss:$16 sps:$4 sm:$0xff]  }
 0x1b3   :  { %2321 = vmatprep.subr.bf16.mxu0 %v5686_v34  ;;  %2403 = vmatprep.subr.bf16.mxu1 %v5689_v35  ;;  %v5757_v34 = vld [vmem:[#allocation10 + $0x120] ss:$16 sps:$4 sm:$0xff]   ;;  %v5760_v35 = vld [vmem:[#allocation10 + $0x128] ss:$16 sps:$4 sm:$0xff]  }
 0x1b6   :  { %2322 = vmatpush1.bf16.msra.mxu0 %v5684_v36  ;;  %2404 = vmatpush1.bf16.msra.mxu1 %v5687_v37  ;;  %v5765_v36 = vld [vmem:[#allocation10 + $0x144] ss:$16 sps:$4 sm:$0xff]   ;;  %v5768_v37 = vld [vmem:[#allocation10 + $0x14c] ss:$16 sps:$4 sm:$0xff]  }
 0x1b7   :  { %2323 = vmatprep.subr.bf16.mxu0 %v5692_v38  ;;  %2405 = vmatprep.subr.bf16.mxu1 %v5695_v39  ;;  %v5763_v38 = vld [vmem:[#allocation10 + $0x140] ss:$16 sps:$4 sm:$0xff]   ;;  %v5766_v39 = vld [vmem:[#allocation10 + $0x148] ss:$16 sps:$4 sm:$0xff]  }
 0x1ba   :  { %2324 = vmatpush1.bf16.msra.mxu0 %v5690_v40  ;;  %2406 = vmatpush1.bf16.msra.mxu1 %v5693_v41  ;;  %v5771_v40 = vld [vmem:[#allocation10 + $0x164] ss:$16 sps:$4 sm:$0xff]   ;;  %v5774_v41 = vld [vmem:[#allocation10 + $0x16c] ss:$16 sps:$4 sm:$0xff]  }
 0x1bb   :  { %2325 = vmatprep.subr.bf16.mxu0 %v5698_v42  ;;  %2407 = vmatprep.subr.bf16.mxu1 %v5701_v43  ;;  %v5769_v42 = vld [vmem:[#allocation10 + $0x160] ss:$16 sps:$4 sm:$0xff]   ;;  %v5772_v43 = vld [vmem:[#allocation10 + $0x168] ss:$16 sps:$4 sm:$0xff]  }
 0x1be   :  { %2326 = vmatpush1.bf16.msra.mxu0 %v5696_v44  ;;  %2408 = vmatpush1.bf16.msra.mxu1 %v5699_v45  ;;  %v5777_v44 = vld [vmem:[#allocation10 + $0x184] ss:$16 sps:$4 sm:$0xff]   ;;  %v5780_v45 = vld [vmem:[#allocation10 + $0x18c] ss:$16 sps:$4 sm:$0xff]  }
 0x1bf   :  { %3056 = vmatprep.subr.bf16.mxu0 %v5705_v46  ;;  %3138 = vmatprep.subr.bf16.mxu1 %v5708_v48  ;;  %v5775_v46 = vld [vmem:[#allocation10 + $0x180] ss:$16 sps:$4 sm:$0xff]   ;;  %v5783_v48 = vld [vmem:[#allocation10 + $0x1a4] ss:$16 sps:$4 sm:$0xff]  }
 0x1c1   :  { %2344 = vmatmul.mubr.bf16.vlgmr.msra.gmra.mrb[8].mxu0 %v5702_v47  ;;  %2426 = vmatmul.mubr.bf16.vlgmr.msra.gmra.mrb[8].mxu1 %v5702_v47  ;;  %v5778_v47 = vld [vmem:[#allocation10 + $0x188] ss:$16 sps:$4 sm:$0xff]  }
 0x1c2   :  { %3057 = vmatpush1.bf16.msra.mxu0 %v5703_v50  ;;  %3139 = vmatpush1.bf16.msra.mxu1 %v5706_v51  ;;  %v5786_v50 = vld [vmem:[#allocation10 + $0x1ac] ss:$16 sps:$4 sm:$0xff]   ;;  %v5781_v51 = vld [vmem:[#allocation10 + $0x1a0] ss:$16 sps:$4 sm:$0xff]  }
 0x1c3   :  { %3058 = vmatprep.subr.bf16.mxu0 %v5711_v52  ;;  %3140 = vmatprep.subr.bf16.mxu1 %v5714_v53  ;;  %v5784_v52 = vld [vmem:[#allocation10 + $0x1a8] ss:$16 sps:$4 sm:$0xff]   ;;  %v5789_v53 = vld [vmem:[#allocation10 + $0x1c4] ss:$16 sps:$4 sm:$0xff]  }
 0x1c4   :  { %3088 = vmatprep.mubr.bf16.mxu0 %v4857_v54  ;;  %3170 = vmatprep.mubr.bf16.mxu1 %v4857_v54  ;;  %v5792_v54 = vld [vmem:[#allocation10 + $0x1cc] ss:$16 sps:$4 sm:$0xff]  }
 0x1c6   :  { %3059 = vmatpush1.bf16.msra.mxu0 %v5709_v55  ;;  %3141 = vmatpush1.bf16.msra.mxu1 %v5712_v56  ;;  %v5787_v55 = vld [vmem:[#allocation10 + $0x1c0] ss:$16 sps:$4 sm:$0xff]   ;;  %v5790_v56 = vld [vmem:[#allocation10 + $0x1c8] ss:$16 sps:$4 sm:$0xff]  }
 0x1c7   :  { %3060 = vmatprep.subr.bf16.mxu0 %v5717_v57  ;;  %3142 = vmatprep.subr.bf16.mxu1 %v5720_v58  ;;  %v5795_v57 = vld [vmem:[#allocation10 + $0x1e4] ss:$16 sps:$4 sm:$0xff]   ;;  %v5798_v58 = vld [vmem:[#allocation10 + $0x1ec] ss:$16 sps:$4 sm:$0xff]  }
 0x1ca   :  { %3061 = vmatpush1.bf16.msra.mxu0 %v5715_v59  ;;  %3143 = vmatpush1.bf16.msra.mxu1 %v5718_v60  ;;  %v5793_v59 = vld [vmem:[#allocation10 + $0x1e0] ss:$16 sps:$4 sm:$0xff]   ;;  %v5796_v60 = vld [vmem:[#allocation10 + $0x1e8] ss:$16 sps:$4 sm:$0xff]  }
 0x1cb   :  { %3062 = vmatprep.subr.bf16.mxu0 %v5723_v61  ;;  %3144 = vmatprep.subr.bf16.mxu1 %v5726_v62  ;;  %v5803_v61 = vld [vmem:[#allocation10 + $0x204] ss:$16 sps:$4 sm:$0xff]   ;;  %v5806_v62 = vld [vmem:[#allocation10 + $0x20c] ss:$16 sps:$4 sm:$0xff]  }
 0x1ce   :  { %3063 = vmatpush1.bf16.msra.mxu0 %v5721_v63  ;;  %3145 = vmatpush1.bf16.msra.mxu1 %v5724_v0  ;;  %v4856_v63 = vcombine.low %v6547_v49, %v6547_v49  ;;  %v6555_v0 = vld [vmem:[#allocation2 + $0x14] sm:$0xff] }
 0x1cf   :  { %3064 = vmatprep.subr.bf16.mxu0 %v5729_v1  ;;  %3146 = vmatprep.subr.bf16.mxu1 %v5732_v2  ;;  %v5801_v1 = vld [vmem:[#allocation10 + $0x200] ss:$16 sps:$4 sm:$0xff]   ;;  %v5804_v2 = vld [vmem:[#allocation10 + $0x208] ss:$16 sps:$4 sm:$0xff]  }
 0x1d0   :  { %v5810_v49 = vld [vmem:[#allocation10 + $0x228] ss:$16 sps:$4 sm:$0xff]  }
 0x1d2   :  { %3065 = vmatpush1.bf16.msra.mxu0 %v5727_v3  ;;  %3147 = vmatpush1.bf16.msra.mxu1 %v5730_v4  ;;  %v5809_v3 = vld [vmem:[#allocation10 + $0x224] ss:$16 sps:$4 sm:$0xff]   ;;  %v5812_v4 = vld [vmem:[#allocation10 + $0x22c] ss:$16 sps:$4 sm:$0xff]  }
 0x1d3   :  { %3066 = vmatprep.subr.bf16.mxu0 %v5735_v5  ;;  %3148 = vmatprep.subr.bf16.mxu1 %v5738_v6  ;;  %v4859_v5 = vcombine.high %v6555_v0, %v6555_v0  ;;  %v5807_v6 = vld [vmem:[#allocation10 + $0x220] ss:$16 sps:$4 sm:$0xff]  }
 0x1d4   :  { %v833_v11 = vpop.f32.mrb[0].mxu0  ;;  %v915_v12 = vpop.f32.mrb[0].mxu1 }
 0x1d5   :  { %v835_v15 = vpop.f32.mrb[1].mxu0  ;;  %v917_v16 = vpop.f32.mrb[1].mxu1 }
 0x1d6   :  { %v922_v17 = vmax.f32 %v833_v11, %v835_v15  ;;  %v923_v18 = vmax.f32 %v915_v12, %v917_v16  ;;  %v837_v19 = vpop.f32.mrb[2].mxu0  ;;  %v919_v20 = vpop.f32.mrb[2].mxu1  ;;  %3067 = vmatpush1.bf16.msra.mxu0 %v5733_v7  ;;  %3149 = vmatpush1.bf16.msra.mxu1 %v5736_v8  ;;  %v5815_v7 = vld [vmem:[#allocation10 + $0x244] ss:$16 sps:$4 sm:$0xff]   ;;  %v5818_v8 = vld [vmem:[#allocation10 + $0x24c] ss:$16 sps:$4 sm:$0xff]  }
 0x1d7   :  { %v838_v23 = vpop.f32.mrb[3].mxu0  ;;  %v920_v24 = vpop.f32.mrb[3].mxu1  ;;  %3068 = vmatprep.subr.bf16.mxu0 %v5741_v9  ;;  %3150 = vmatprep.subr.bf16.mxu1 %v5744_v10  ;;  %v5813_v9 = vld [vmem:[#allocation10 + $0x240] ss:$16 sps:$4 sm:$0xff]   ;;  %v5816_v10 = vld [vmem:[#allocation10 + $0x248] ss:$16 sps:$4 sm:$0xff]  }
 0x1d8   :  { %v6551_v26 = vmax.f32 %v922_v17, %v923_v18  ;;  %v5821_v11 = vld [vmem:[#allocation10 + $0x264] ss:$16 sps:$4 sm:$0xff]   ;;  %v5824_v12 = vld [vmem:[#allocation10 + $0x26c] ss:$16 sps:$4 sm:$0xff]   ;;  %v5819_v15 = vld [vmem:[#allocation10 + $0x260] ss:$16 sps:$4 sm:$0xff]  }
 0x1d9   :  { %v5822_v16 = vld [vmem:[#allocation10 + $0x268] ss:$16 sps:$4 sm:$0xff]   ;;  %v5827_v17 = vld [vmem:[#allocation10 + $0x284] ss:$16 sps:$4 sm:$0xff]   ;;  %v5830_v18 = vld [vmem:[#allocation10 + $0x28c] ss:$16 sps:$4 sm:$0xff]  }
 0x1da   :  { %3069 = vmatpush1.bf16.msra.mxu0 %v5739_v21  ;;  %3151 = vmatpush1.bf16.msra.mxu1 %v5742_v22  ;;  %v5825_v19 = vld [vmem:[#allocation10 + $0x280] ss:$16 sps:$4 sm:$0xff]   ;;  %v5828_v20 = vld [vmem:[#allocation10 + $0x288] ss:$16 sps:$4 sm:$0xff]   ;;  %v5833_v21 = vld [vmem:[#allocation10 + $0x2a4] ss:$16 sps:$4 sm:$0xff]  }
 0x1db   :  { %3070 = vmatprep.subr.bf16.mxu0 %v5747_v25  ;;  %3152 = vmatprep.subr.bf16.mxu1 %v5750_v14  ;;  %v5836_v22 = vld [vmem:[#allocation10 + $0x2ac] ss:$16 sps:$4 sm:$0xff]   ;;  %v5831_v23 = vld [vmem:[#allocation10 + $0x2a0] ss:$16 sps:$4 sm:$0xff]   ;;  %v5834_v24 = vld [vmem:[#allocation10 + $0x2a8] ss:$16 sps:$4 sm:$0xff]  }
 0x1dc   :  { %v5839_v25 = vld [vmem:[#allocation10 + $0x2c4] ss:$16 sps:$4 sm:$0xff]   ;;  %v5842_v14 = vld [vmem:[#allocation10 + $0x2cc] ss:$16 sps:$4 sm:$0xff]  }
 0x1de   :  { %3071 = vmatpush1.bf16.msra.mxu0 %v5745_v27  ;;  %3153 = vmatpush1.bf16.msra.mxu1 %v5748_v28  ;;  %v5837_v27 = vld [vmem:[#allocation10 + $0x2c0] ss:$16 sps:$4 sm:$0xff]   ;;  %v5840_v28 = vld [vmem:[#allocation10 + $0x2c8] ss:$16 sps:$4 sm:$0xff]  }
 0x1df   :  { %3072 = vmatprep.subr.bf16.mxu0 %v5753_v29  ;;  %3154 = vmatprep.subr.bf16.mxu1 %v5756_v30  ;;  %v5845_v29 = vld [vmem:[#allocation10 + $0x2e4] ss:$16 sps:$4 sm:$0xff]   ;;  %v5848_v30 = vld [vmem:[#allocation10 + $0x2ec] ss:$16 sps:$4 sm:$0xff]  }
 0x1e2   :  { %3073 = vmatpush1.bf16.msra.mxu0 %v5751_v31  ;;  %3155 = vmatpush1.bf16.msra.mxu1 %v5754_v32  ;;  %v5843_v31 = vld [vmem:[#allocation10 + $0x2e0] ss:$16 sps:$4 sm:$0xff]   ;;  %v5846_v32 = vld [vmem:[#allocation10 + $0x2e8] ss:$16 sps:$4 sm:$0xff]  }
 0x1e3   :  { %3074 = vmatprep.subr.bf16.mxu0 %v5759_v33  ;;  %3156 = vmatprep.subr.bf16.mxu1 %v5762_v13  ;;  %v5851_v33 = vld [vmem:[#allocation10 + $0x304] ss:$16 sps:$4 sm:$0xff]   ;;  %v5854_v13 = vld [vmem:[#allocation10 + $0x30c] ss:$16 sps:$4 sm:$0xff]  }
 0x1e6   :  { %3075 = vmatpush1.bf16.msra.mxu0 %v5757_v34  ;;  %3157 = vmatpush1.bf16.msra.mxu1 %v5760_v35  ;;  %v5849_v34 = vld [vmem:[#allocation10 + $0x300] ss:$16 sps:$4 sm:$0xff]   ;;  %v5852_v35 = vld [vmem:[#allocation10 + $0x308] ss:$16 sps:$4 sm:$0xff]  }
 0x1e7   :  { %3076 = vmatprep.subr.bf16.mxu0 %v5765_v36  ;;  %3158 = vmatprep.subr.bf16.mxu1 %v5768_v37  ;;  %v5859_v36 = vld [vmem:[#allocation11 + $0x4] ss:$16 sps:$4 sm:$0xff]   ;;  %v5862_v37 = vld [vmem:[#allocation11 + $0xc] ss:$16 sps:$4 sm:$0xff]  }
 0x1ea   :  { %3077 = vmatpush1.bf16.msra.mxu0 %v5763_v38  ;;  %3159 = vmatpush1.bf16.msra.mxu1 %v5766_v39  ;;  %v4858_v38 = vcombine.low %v6555_v0, %v6555_v0  ;;  %v5857_v39 = vld [vmem:[#allocation11] ss:$16 sps:$4 sm:$0xff]  }
 0x1eb   :  { %3078 = vmatprep.subr.bf16.mxu0 %v5771_v40  ;;  %3160 = vmatprep.subr.bf16.mxu1 %v5774_v41  ;;  %v5860_v40 = vld [vmem:[#allocation11 + $0x8] ss:$16 sps:$4 sm:$0xff]   ;;  %v5865_v41 = vld [vmem:[#allocation11 + $0x24] ss:$16 sps:$4 sm:$0xff]  }
 0x1ee   :  { %3079 = vmatpush1.bf16.msra.mxu0 %v5769_v42  ;;  %3161 = vmatpush1.bf16.msra.mxu1 %v5772_v43  ;;  %v5868_v42 = vld [vmem:[#allocation11 + $0x2c] ss:$16 sps:$4 sm:$0xff]   ;;  %v5863_v43 = vld [vmem:[#allocation11 + $0x20] ss:$16 sps:$4 sm:$0xff]  }
 0x1ef   :  { %3080 = vmatprep.subr.bf16.mxu0 %v5777_v44  ;;  %3162 = vmatprep.subr.bf16.mxu1 %v5780_v45  ;;  %v5866_v44 = vld [vmem:[#allocation11 + $0x28] ss:$16 sps:$4 sm:$0xff]   ;;  %v5871_v45 = vld [vmem:[#allocation11 + $0x44] ss:$16 sps:$4 sm:$0xff]  }
 0x1f2   :  { %3081 = vmatpush1.bf16.msra.mxu0 %v5775_v46  ;;  %3163 = vmatpush1.bf16.msra.mxu1 %v5778_v47  ;;  %v5874_v46 = vld [vmem:[#allocation11 + $0x4c] ss:$16 sps:$4 sm:$0xff]   ;;  %v5869_v47 = vld [vmem:[#allocation11 + $0x40] ss:$16 sps:$4 sm:$0xff]  }
 0x1f3   :  { %3082 = vmatprep.subr.bf16.mxu0 %v5783_v48  ;;  %3164 = vmatprep.subr.bf16.mxu1 %v5786_v50  ;;  %v5872_v48 = vld [vmem:[#allocation11 + $0x48] ss:$16 sps:$4 sm:$0xff]   ;;  %v5877_v50 = vld [vmem:[#allocation11 + $0x64] ss:$16 sps:$4 sm:$0xff]  }
 0x1f6   :  { %3083 = vmatpush1.bf16.msra.mxu0 %v5781_v51  ;;  %3165 = vmatpush1.bf16.msra.mxu1 %v5784_v52  ;;  %v5880_v51 = vld [vmem:[#allocation11 + $0x6c] ss:$16 sps:$4 sm:$0xff]   ;;  %v3225_v52 = vlaneseq }
 0x1f7   :  { %3084 = vmatprep.subr.bf16.mxu0 %v5789_v53  ;;  %3166 = vmatprep.subr.bf16.mxu1 %v5792_v54  ;;  %v5875_v53 = vld [vmem:[#allocation11 + $0x60] ss:$16 sps:$4 sm:$0xff]   ;;  %v5878_v54 = vld [vmem:[#allocation11 + $0x68] ss:$16 sps:$4 sm:$0xff]  }
 0x1fa   :  { %3085 = vmatpush1.bf16.msra.mxu0 %v5787_v55  ;;  %3167 = vmatpush1.bf16.msra.mxu1 %v5790_v56  ;;  %v5883_v55 = vld [vmem:[#allocation11 + $0x84] ss:$16 sps:$4 sm:$0xff]   ;;  %v5886_v56 = vld [vmem:[#allocation11 + $0x8c] ss:$16 sps:$4 sm:$0xff]  }
 0x1fb   :  { %3086 = vmatprep.subr.bf16.mxu0 %v5795_v57  ;;  %3168 = vmatprep.subr.bf16.mxu1 %v5798_v58  ;;  %v6561_v57 = vshrl.u32 %v3225_v52, 7  ;;  %v5943_v52 = vld [vmem:[#allocation11 + $0x1c4] ss:$16 sps:$4 sm:$0xff]  }
 0x1fd   :  { %v3231_v58 = vsub.s32 1, %v6561_v57 }
 0x1fe   :  { %3087 = vmatpush1.bf16.msra.mxu0 %v5793_v59  ;;  %3169 = vmatpush1.bf16.msra.mxu1 %v5796_v60  ;;  %v5881_v59 = vld [vmem:[#allocation11 + $0x80] ss:$16 sps:$4 sm:$0xff]   ;;  %v5884_v60 = vld [vmem:[#allocation11 + $0x88] ss:$16 sps:$4 sm:$0xff]  }
 0x1ff   :  { %3097 = vmatprep.subr.bf16.mxu0 %v5803_v61  ;;  %3179 = vmatprep.subr.bf16.mxu1 %v5806_v62  ;;  %v5889_v61 = vld [vmem:[#allocation11 + $0xa4] ss:$16 sps:$4 sm:$0xff]   ;;  %v5892_v62 = vld [vmem:[#allocation11 + $0xac] ss:$16 sps:$4 sm:$0xff]  }
 0x201   :  { %3089 = vmatmul.mubr.bf16.vlgmr.msra.gmra.mrb[12].mxu0 %v4856_v63  ;;  %3171 = vmatmul.mubr.bf16.vlgmr.msra.gmra.mrb[12].mxu1 %v4856_v63 }
 0x202   :  { %3098 = vmatpush1.bf16.msra.mxu0 %v5801_v1  ;;  %3180 = vmatpush1.bf16.msra.mxu1 %v5804_v2  ;;  %v6567_v1 = vld [vmem:[%s6636_s5] sm:$0xf] }
 0x203   :  { %3099 = vmatprep.subr.bf16.mxu0 %v5809_v3  ;;  %3181 = vmatprep.subr.bf16.mxu1 %v5812_v4 }
 0x204   :  { %4960 = vmatprep.mubr.msk.bf16.mxu0 %vm3052_vm0, %v4859_v5  ;;  %4961 = vmatprep.mubr.msk.bf16.mxu1 %vm3052_vm0, %v4859_v5 }
 0x206   :  { %3100 = vmatpush1.bf16.msra.mxu0 %v5807_v6  ;;  %3182 = vmatpush1.bf16.msra.mxu1 %v5810_v49  ;;  %v3232_v6 = vrot.slane %v6567_v1, %v3231_v58  ;;  %v5949_v58 = vld [vmem:[#allocation11 + $0x1e4] ss:$16 sps:$4 sm:$0xff]  }
 0x207   :  { %3101 = vmatprep.subr.bf16.mxu0 %v5815_v7  ;;  %3183 = vmatprep.subr.bf16.mxu1 %v5818_v8  ;;  %v5887_v8 = vld [vmem:[#allocation11 + $0xa0] ss:$16 sps:$4 sm:$0xff]  }
 0x20a   :  { %3102 = vmatpush1.bf16.msra.mxu0 %v5813_v9  ;;  %3184 = vmatpush1.bf16.msra.mxu1 %v5816_v10  ;;  %v5890_v9 = vld [vmem:[#allocation11 + $0xa8] ss:$16 sps:$4 sm:$0xff]  }
 0x20b   :  { %3103 = vmatprep.subr.bf16.mxu0 %v5821_v11  ;;  %3185 = vmatprep.subr.bf16.mxu1 %v5824_v12  ;;  %v5895_v12 = vld [vmem:[#allocation11 + $0xc4] ss:$16 sps:$4 sm:$0xff]  }
 0x20e   :  { %3104 = vmatpush1.bf16.msra.mxu0 %v5819_v15  ;;  %3186 = vmatpush1.bf16.msra.mxu1 %v5822_v16  ;;  %v5898_v15 = vld [vmem:[#allocation11 + $0xcc] ss:$16 sps:$4 sm:$0xff]  }
 0x20f   :  { %3105 = vmatprep.subr.bf16.mxu0 %v5827_v17  ;;  %3187 = vmatprep.subr.bf16.mxu1 %v5830_v18  ;;  %v5893_v18 = vld [vmem:[#allocation11 + $0xc0] ss:$16 sps:$4 sm:$0xff]  }
 0x212   :  { %3106 = vmatpush1.bf16.msra.mxu0 %v5825_v19  ;;  %3188 = vmatpush1.bf16.msra.mxu1 %v5828_v20  ;;  %v5896_v19 = vld [vmem:[#allocation11 + $0xc8] ss:$16 sps:$4 sm:$0xff]   ;;  %v5901_v20 = vld [vmem:[#allocation11 + $0xe4] ss:$16 sps:$4 sm:$0xff]  }
 0x213   :  { %3107 = vmatprep.subr.bf16.mxu0 %v5833_v21  ;;  %3189 = vmatprep.subr.bf16.mxu1 %v5836_v22  ;;  %v5904_v21 = vld [vmem:[#allocation11 + $0xec] ss:$16 sps:$4 sm:$0xff]  }
 0x216   :  { %3108 = vmatpush1.bf16.msra.mxu0 %v5831_v23  ;;  %3190 = vmatpush1.bf16.msra.mxu1 %v5834_v24  ;;  %v5899_v24 = vld [vmem:[#allocation11 + $0xe0] ss:$16 sps:$4 sm:$0xff]  }
 0x217   :  { %3109 = vmatprep.subr.bf16.mxu0 %v5839_v25  ;;  %3191 = vmatprep.subr.bf16.mxu1 %v5842_v14  ;;  %v5902_v25 = vld [vmem:[#allocation11 + $0xe8] ss:$16 sps:$4 sm:$0xff]   ;;  %v5907_v14 = vld [vmem:[#allocation11 + $0x104] ss:$16 sps:$4 sm:$0xff]  }
 0x21a   :  { %3110 = vmatpush1.bf16.msra.mxu0 %v5837_v27  ;;  %3192 = vmatpush1.bf16.msra.mxu1 %v5840_v28  ;;  %v5910_v27 = vld [vmem:[#allocation11 + $0x10c] ss:$16 sps:$4 sm:$0xff]   ;;  %v5905_v28 = vld [vmem:[#allocation11 + $0x100] ss:$16 sps:$4 sm:$0xff]  }
 0x21b   :  { %3111 = vmatprep.subr.bf16.mxu0 %v5845_v29  ;;  %3193 = vmatprep.subr.bf16.mxu1 %v5848_v30  ;;  %v5908_v29 = vld [vmem:[#allocation11 + $0x108] ss:$16 sps:$4 sm:$0xff]   ;;  %v5913_v30 = vld [vmem:[#allocation11 + $0x124] ss:$16 sps:$4 sm:$0xff]  }
 0x21e   :  { %3112 = vmatpush1.bf16.msra.mxu0 %v5843_v31  ;;  %3194 = vmatpush1.bf16.msra.mxu1 %v5846_v32  ;;  %v5916_v31 = vld [vmem:[#allocation11 + $0x12c] ss:$16 sps:$4 sm:$0xff]   ;;  %v5911_v32 = vld [vmem:[#allocation11 + $0x120] ss:$16 sps:$4 sm:$0xff]  }
 0x21f   :  { %3113 = vmatprep.subr.bf16.mxu0 %v5851_v33  ;;  %3195 = vmatprep.subr.bf16.mxu1 %v5854_v13  ;;  %v5914_v33 = vld [vmem:[#allocation11 + $0x128] ss:$16 sps:$4 sm:$0xff]   ;;  %v5919_v13 = vld [vmem:[#allocation11 + $0x144] ss:$16 sps:$4 sm:$0xff]  }
 0x222   :  { %3114 = vmatpush1.bf16.msra.mxu0 %v5849_v34  ;;  %3196 = vmatpush1.bf16.msra.mxu1 %v5852_v35  ;;  %v5922_v34 = vld [vmem:[#allocation11 + $0x14c] ss:$16 sps:$4 sm:$0xff]   ;;  %v5917_v35 = vld [vmem:[#allocation11 + $0x140] ss:$16 sps:$4 sm:$0xff]  }
 0x223   :  { %4025 = vmatprep.subr.bf16.mxu0 %v5859_v36  ;;  %4107 = vmatprep.subr.bf16.mxu1 %v5862_v37  ;;  %v5920_v36 = vld [vmem:[#allocation11 + $0x148] ss:$16 sps:$4 sm:$0xff]   ;;  %v5925_v37 = vld [vmem:[#allocation11 + $0x164] ss:$16 sps:$4 sm:$0xff]  }
 0x225   :  { %3130 = vmatmul.mubr.bf16.vlgmr.msra.gmra.mrb[12].mxu0 %v4858_v38  ;;  %3212 = vmatmul.mubr.bf16.vlgmr.msra.gmra.mrb[12].mxu1 %v4858_v38  ;;  %v5928_v38 = vld [vmem:[#allocation11 + $0x16c] ss:$16 sps:$4 sm:$0xff]  }
 0x226   :  { %4026 = vmatpush1.bf16.msra.mxu0 %v5857_v39  ;;  %4108 = vmatpush1.bf16.msra.mxu1 %v5860_v40  ;;  %v5923_v39 = vld [vmem:[#allocation11 + $0x160] ss:$16 sps:$4 sm:$0xff]   ;;  %v5926_v40 = vld [vmem:[#allocation11 + $0x168] ss:$16 sps:$4 sm:$0xff]  }
 0x227   :  { %4027 = vmatprep.subr.bf16.mxu0 %v5865_v41  ;;  %4109 = vmatprep.subr.bf16.mxu1 %v5868_v42  ;;  %v5931_v41 = vld [vmem:[#allocation11 + $0x184] ss:$16 sps:$4 sm:$0xff]   ;;  %v5934_v42 = vld [vmem:[#allocation11 + $0x18c] ss:$16 sps:$4 sm:$0xff]  }
 0x22a   :  { %4028 = vmatpush1.bf16.msra.mxu0 %v5863_v43  ;;  %4110 = vmatpush1.bf16.msra.mxu1 %v5866_v44  ;;  %v5929_v43 = vld [vmem:[#allocation11 + $0x180] ss:$16 sps:$4 sm:$0xff]   ;;  %v5932_v44 = vld [vmem:[#allocation11 + $0x188] ss:$16 sps:$4 sm:$0xff]  }
 0x22b   :  { %4029 = vmatprep.subr.bf16.mxu0 %v5871_v45  ;;  %4111 = vmatprep.subr.bf16.mxu1 %v5874_v46  ;;  %v3227_v45 = vsub.s32 0, %v6561_v57  ;;  %v5937_v46 = vld [vmem:[#allocation11 + $0x1a4] ss:$16 sps:$4 sm:$0xff]  }
 0x22e   :  { %4030 = vmatpush1.bf16.msra.mxu0 %v5869_v47  ;;  %4112 = vmatpush1.bf16.msra.mxu1 %v5872_v48  ;;  %v5940_v47 = vld [vmem:[#allocation11 + $0x1ac] ss:$16 sps:$4 sm:$0xff]   ;;  %v5935_v48 = vld [vmem:[#allocation11 + $0x1a0] ss:$16 sps:$4 sm:$0xff]  }
 0x22f   :  { %4031 = vmatprep.subr.bf16.mxu0 %v5877_v50  ;;  %4113 = vmatprep.subr.bf16.mxu1 %v5880_v51  ;;  %v5938_v50 = vld [vmem:[#allocation11 + $0x1a8] ss:$16 sps:$4 sm:$0xff]   ;;  %v3228_v51 = vrot.slane %v6567_v1, %v3227_v45  ;;  %v6024_v45 = vld [vmem:[#allocation11 + $0x36c] ss:$16 sps:$4 sm:$0xff]  }
 0x232   :  { %4032 = vmatpush1.bf16.msra.mxu0 %v5875_v53  ;;  %4114 = vmatpush1.bf16.msra.mxu1 %v5878_v54  ;;  %v5946_v53 = vld [vmem:[#allocation11 + $0x1cc] ss:$16 sps:$4 sm:$0xff]   ;;  %v5941_v54 = vld [vmem:[#allocation11 + $0x1c0] ss:$16 sps:$4 sm:$0xff]  }
 0x233   :  { %4033 = vmatprep.subr.bf16.mxu0 %v5883_v55  ;;  %4115 = vmatprep.subr.bf16.mxu1 %v5886_v56  ;;  %v5944_v55 = vld [vmem:[#allocation11 + $0x1c8] ss:$16 sps:$4 sm:$0xff]   ;;  %v3245_v56 = vadd.f32 %v3228_v51, %v6551_v26  ;;  %v5961_v26 = vld [vmem:[#allocation11 + $0x224] ss:$16 sps:$4 sm:$0xff]   ;;  %v6025_v51 = vld [vmem:[#allocation11 + $0x380] ss:$16 sps:$4 sm:$0xff]  }
 0x234   :  { %v1589_v63 = vpop.f32.mrb[4].mxu0  ;;  %v1671_v0 = vpop.f32.mrb[4].mxu1 }
 0x235   :  { %v1591_v2 = vpop.f32.mrb[5].mxu0  ;;  %v1673_v3 = vpop.f32.mrb[5].mxu1 }
 0x236   :  { %v1678_v4 = vmax.f32 %v1589_v63, %v1591_v2  ;;  %v1679_v5 = vmax.f32 %v1671_v0, %v1673_v3  ;;  %v1593_v49 = vpop.f32.mrb[6].mxu0  ;;  %v1675_v7 = vpop.f32.mrb[6].mxu1  ;;  %4034 = vmatpush1.bf16.msra.mxu0 %v5881_v59  ;;  %4116 = vmatpush1.bf16.msra.mxu1 %v5884_v60  ;;  %v5952_v59 = vld [vmem:[#allocation11 + $0x1ec] ss:$16 sps:$4 sm:$0xff]   ;;  %v5947_v60 = vld [vmem:[#allocation11 + $0x1e0] ss:$16 sps:$4 sm:$0xff]  }
 0x237   :  { %v1594_v10 = vpop.f32.mrb[7].mxu0  ;;  %v1676_v11 = vpop.f32.mrb[7].mxu1  ;;  %4035 = vmatprep.subr.bf16.mxu0 %v5889_v61  ;;  %4117 = vmatprep.subr.bf16.mxu1 %v5892_v62  ;;  %v5950_v61 = vld [vmem:[#allocation11 + $0x1e8] ss:$16 sps:$4 sm:$0xff]   ;;  %v3249_v62 = vmax.f32 %v3245_v56, 0.0 }
 0x238   :  { %v1680_v16 = vmax.f32 %v1678_v4, %v1679_v5  ;;  %v5955_v63 = vld [vmem:[#allocation11 + $0x204] ss:$16 sps:$4 sm:$0xff]   ;;  %v5958_v0 = vld [vmem:[#allocation11 + $0x20c] ss:$16 sps:$4 sm:$0xff]   ;;  %v5953_v2 = vld [vmem:[#allocation11 + $0x200] ss:$16 sps:$4 sm:$0xff]  }
 0x239   :  { %v5956_v3 = vld [vmem:[#allocation11 + $0x208] ss:$16 sps:$4 sm:$0xff]   ;;  %v3253_v4 = vpack.c.bf16 %v3249_v62, %v3249_v62  ;;  %v5964_v5 = vld [vmem:[#allocation11 + $0x22c] ss:$16 sps:$4 sm:$0xff]   ;;  %v5967_v7 = vld [vmem:[#allocation11 + $0x244] ss:$16 sps:$4 sm:$0xff]  }
 0x23a   :  { %v3246_v17 = vadd.f32 %v3232_v6, %v1680_v16  ;;  %4036 = vmatpush1.bf16.msra.mxu0 %v5887_v8  ;;  %4118 = vmatpush1.bf16.msra.mxu1 %v5890_v9  ;;  %v5959_v6 = vld [vmem:[#allocation11 + $0x220] ss:$16 sps:$4 sm:$0xff]   ;;  %v5962_v49 = vld [vmem:[#allocation11 + $0x228] ss:$16 sps:$4 sm:$0xff]   ;;  %v5970_v8 = vld [vmem:[#allocation11 + $0x24c] ss:$16 sps:$4 sm:$0xff]  }
 0x23b   :  { %4037 = vmatprep.subr.bf16.mxu0 %v5895_v12  ;;  %4119 = vmatprep.subr.bf16.mxu1 %v5898_v15  ;;  %v5965_v9 = vld [vmem:[#allocation11 + $0x240] ss:$16 sps:$4 sm:$0xff]   ;;  %v5968_v10 = vld [vmem:[#allocation11 + $0x248] ss:$16 sps:$4 sm:$0xff]   ;;  %v5973_v11 = vld [vmem:[#allocation11 + $0x264] ss:$16 sps:$4 sm:$0xff]  }
 0x23c   :  { %v3250_v22 = vmax.f32 %v3246_v17, 0.0  ;;  %v5976_v12 = vld [vmem:[#allocation11 + $0x26c] ss:$16 sps:$4 sm:$0xff]   ;;  %v5971_v15 = vld [vmem:[#allocation11 + $0x260] ss:$16 sps:$4 sm:$0xff]  }
 0x23d   :  { %v5974_v16 = vld [vmem:[#allocation11 + $0x268] ss:$16 sps:$4 sm:$0xff]   ;;  %v5979_v17 = vld [vmem:[#allocation11 + $0x284] ss:$16 sps:$4 sm:$0xff]  }
 0x23e   :  { %4038 = vmatpush1.bf16.msra.mxu0 %v5893_v18  ;;  %4120 = vmatpush1.bf16.msra.mxu1 %v5896_v19  ;;  %v3254_v23 = vpack.c.bf16 %v3250_v22, %v3250_v22  ;;  %v5982_v18 = vld [vmem:[#allocation11 + $0x28c] ss:$16 sps:$4 sm:$0xff]   ;;  %v5977_v19 = vld [vmem:[#allocation11 + $0x280] ss:$16 sps:$4 sm:$0xff]  }
 0x23f   :  { %4039 = vmatprep.subr.bf16.mxu0 %v5901_v20  ;;  %4121 = vmatprep.subr.bf16.mxu1 %v5904_v21  ;;  %v5980_v20 = vld [vmem:[#allocation11 + $0x288] ss:$16 sps:$4 sm:$0xff]   ;;  %v5985_v21 = vld [vmem:[#allocation11 + $0x2a4] ss:$16 sps:$4 sm:$0xff]   ;;  %v5988_v22 = vld [vmem:[#allocation11 + $0x2ac] ss:$16 sps:$4 sm:$0xff]  }
 0x240   :  { %4057 = vmatprep.mubr.bf16.mxu0 %v3254_v23  ;;  %4139 = vmatprep.mubr.bf16.mxu1 %v3254_v23  ;;  %v5983_v23 = vld [vmem:[#allocation11 + $0x2a0] ss:$16 sps:$4 sm:$0xff]  }
 0x242   :  { %4040 = vmatpush1.bf16.msra.mxu0 %v5899_v24  ;;  %4122 = vmatpush1.bf16.msra.mxu1 %v5902_v25  ;;  %v5986_v24 = vld [vmem:[#allocation11 + $0x2a8] ss:$16 sps:$4 sm:$0xff]   ;;  %v5991_v25 = vld [vmem:[#allocation11 + $0x2c4] ss:$16 sps:$4 sm:$0xff]  }
 0x243   :  { %4041 = vmatprep.subr.bf16.mxu0 %v5907_v14  ;;  %4123 = vmatprep.subr.bf16.mxu1 %v5910_v27  ;;  %v5994_v14 = vld [vmem:[#allocation11 + $0x2cc] ss:$16 sps:$4 sm:$0xff]   ;;  %v5989_v27 = vld [vmem:[#allocation11 + $0x2c0] ss:$16 sps:$4 sm:$0xff]  }
 0x246   :  { %4042 = vmatpush1.bf16.msra.mxu0 %v5905_v28  ;;  %4124 = vmatpush1.bf16.msra.mxu1 %v5908_v29  ;;  %v5992_v28 = vld [vmem:[#allocation11 + $0x2c8] ss:$16 sps:$4 sm:$0xff]   ;;  %v5997_v29 = vld [vmem:[#allocation11 + $0x2e4] ss:$16 sps:$4 sm:$0xff]  }
 0x247   :  { %4043 = vmatprep.subr.bf16.mxu0 %v5913_v30  ;;  %4125 = vmatprep.subr.bf16.mxu1 %v5916_v31  ;;  %v6000_v30 = vld [vmem:[#allocation11 + $0x2ec] ss:$16 sps:$4 sm:$0xff]   ;;  %v5995_v31 = vld [vmem:[#allocation11 + $0x2e0] ss:$16 sps:$4 sm:$0xff]  }
 0x24a   :  { %4044 = vmatpush1.bf16.msra.mxu0 %v5911_v32  ;;  %4126 = vmatpush1.bf16.msra.mxu1 %v5914_v33  ;;  %v5998_v32 = vld [vmem:[#allocation11 + $0x2e8] ss:$16 sps:$4 sm:$0xff]   ;;  %v6003_v33 = vld [vmem:[#allocation11 + $0x304] ss:$16 sps:$4 sm:$0xff]  }
 0x24b   :  { %4045 = vmatprep.subr.bf16.mxu0 %v5919_v13  ;;  %4127 = vmatprep.subr.bf16.mxu1 %v5922_v34  ;;  %v6006_v13 = vld [vmem:[#allocation11 + $0x30c] ss:$16 sps:$4 sm:$0xff]   ;;  %v6001_v34 = vld [vmem:[#allocation11 + $0x300] ss:$16 sps:$4 sm:$0xff]  }
 0x24e   :  { %4046 = vmatpush1.bf16.msra.mxu0 %v5917_v35  ;;  %4128 = vmatpush1.bf16.msra.mxu1 %v5920_v36  ;;  %v6004_v35 = vld [vmem:[#allocation11 + $0x308] ss:$16 sps:$4 sm:$0xff]   ;;  %v6009_v36 = vld [vmem:[#allocation11 + $0x324] ss:$16 sps:$4 sm:$0xff]  }
 0x24f   :  { %4047 = vmatprep.subr.bf16.mxu0 %v5925_v37  ;;  %4129 = vmatprep.subr.bf16.mxu1 %v5928_v38  ;;  %v6012_v37 = vld [vmem:[#allocation11 + $0x32c] ss:$16 sps:$4 sm:$0xff]   ;;  %v6007_v38 = vld [vmem:[#allocation11 + $0x320] ss:$16 sps:$4 sm:$0xff]  }
 0x252   :  { %4048 = vmatpush1.bf16.msra.mxu0 %v5923_v39  ;;  %4130 = vmatpush1.bf16.msra.mxu1 %v5926_v40  ;;  %v6010_v39 = vld [vmem:[#allocation11 + $0x328] ss:$16 sps:$4 sm:$0xff]   ;;  %v6015_v40 = vld [vmem:[#allocation11 + $0x344] ss:$16 sps:$4 sm:$0xff]  }
 0x253   :  { %4049 = vmatprep.subr.bf16.mxu0 %v5931_v41  ;;  %4131 = vmatprep.subr.bf16.mxu1 %v5934_v42  ;;  %v6018_v41 = vld [vmem:[#allocation11 + $0x34c] ss:$16 sps:$4 sm:$0xff]   ;;  %v6013_v42 = vld [vmem:[#allocation11 + $0x340] ss:$16 sps:$4 sm:$0xff]  }
 0x256   :  { %4050 = vmatpush1.bf16.msra.mxu0 %v5929_v43  ;;  %4132 = vmatpush1.bf16.msra.mxu1 %v5932_v44  ;;  %v6016_v43 = vld [vmem:[#allocation11 + $0x348] ss:$16 sps:$4 sm:$0xff]   ;;  %v6021_v44 = vld [vmem:[#allocation11 + $0x364] ss:$16 sps:$4 sm:$0xff]  }
 0x257   :  { %4051 = vmatprep.subr.bf16.mxu0 %v5937_v46  ;;  %4133 = vmatprep.subr.bf16.mxu1 %v5940_v47  ;;  %v6019_v46 = vld [vmem:[#allocation11 + $0x360] ss:$16 sps:$4 sm:$0xff]   ;;  %v6022_v47 = vld [vmem:[#allocation11 + $0x368] ss:$16 sps:$4 sm:$0xff]  }
 0x25a   :  { %4052 = vmatpush1.bf16.msra.mxu0 %v5935_v48  ;;  %4134 = vmatpush1.bf16.msra.mxu1 %v5938_v50  ;;  %v6027_v48 = vld [vmem:[#allocation11 + $0x384] ss:$16 sps:$4 sm:$0xff]   ;;  %v6030_v50 = vld [vmem:[#allocation11 + $0x38c] ss:$16 sps:$4 sm:$0xff]  }
 0x25b   :  { %4053 = vmatprep.subr.bf16.mxu0 %v5943_v52  ;;  %4135 = vmatprep.subr.bf16.mxu1 %v5946_v53  ;;  %v6028_v52 = vld [vmem:[#allocation11 + $0x388] ss:$16 sps:$4 sm:$0xff]   ;;  %v6033_v53 = vld [vmem:[#allocation11 + $0x3a4] ss:$16 sps:$4 sm:$0xff]  }
 0x25e   :  { %4054 = vmatpush1.bf16.msra.mxu0 %v5941_v54  ;;  %4136 = vmatpush1.bf16.msra.mxu1 %v5944_v55  ;;  %v6036_v54 = vld [vmem:[#allocation11 + $0x3ac] ss:$16 sps:$4 sm:$0xff]  }
 0x25f   :  { %4055 = vmatprep.subr.bf16.mxu0 %v5949_v58  ;;  %4137 = vmatprep.subr.bf16.mxu1 %v5952_v59 }
 0x262   :  { %4056 = vmatpush1.bf16.msra.mxu0 %v5947_v60  ;;  %4138 = vmatpush1.bf16.msra.mxu1 %v5950_v61 }
 0x263   :  { %4066 = vmatprep.subr.bf16.mxu0 %v5955_v63  ;;  %4148 = vmatprep.subr.bf16.mxu1 %v5958_v0  ;;  %v6031_v0 = vld [vmem:[#allocation11 + $0x3a0] ss:$16 sps:$4 sm:$0xff]  }
 0x265   :  { %4058 = vmatmul.mubr.bf16.vlgmr.msra.gmra.mrb[16].mxu0 %v3253_v4  ;;  %4140 = vmatmul.mubr.bf16.vlgmr.msra.gmra.mrb[16].mxu1 %v3253_v4 }
 0x266   :  { %4067 = vmatpush1.bf16.msra.mxu0 %v5953_v2  ;;  %4149 = vmatpush1.bf16.msra.mxu1 %v5956_v3  ;;  %v6034_v2 = vld [vmem:[#allocation11 + $0x3a8] ss:$16 sps:$4 sm:$0xff]  }
 0x267   :  { %4068 = vmatprep.subr.bf16.mxu0 %v5961_v26  ;;  %4150 = vmatprep.subr.bf16.mxu1 %v5964_v5  ;;  %v6039_v26 = vld [vmem:[#allocation11 + $0x3c4] ss:$16 sps:$4 sm:$0xff]   ;;  %v6042_v5 = vld [vmem:[#allocation11 + $0x3cc] ss:$16 sps:$4 sm:$0xff]  }
 0x26a   :  { %4069 = vmatpush1.bf16.msra.mxu0 %v5959_v6  ;;  %4151 = vmatpush1.bf16.msra.mxu1 %v5962_v49  ;;  %v6037_v49 = vld [vmem:[#allocation11 + $0x3c0] ss:$16 sps:$4 sm:$0xff]  }
 0x26b   :  { %4070 = vmatprep.subr.bf16.mxu0 %v5967_v7  ;;  %4152 = vmatprep.subr.bf16.mxu1 %v5970_v8  ;;  %v6040_v7 = vld [vmem:[#allocation11 + $0x3c8] ss:$16 sps:$4 sm:$0xff]   ;;  %v6045_v8 = vld [vmem:[#allocation11 + $0x3e4] ss:$16 sps:$4 sm:$0xff]  }
 0x26e   :  { %4071 = vmatpush1.bf16.msra.mxu0 %v5965_v9  ;;  %4153 = vmatpush1.bf16.msra.mxu1 %v5968_v10  ;;  %v6048_v9 = vld [vmem:[#allocation11 + $0x3ec] ss:$16 sps:$4 sm:$0xff]   ;;  %v6043_v10 = vld [vmem:[#allocation11 + $0x3e0] ss:$16 sps:$4 sm:$0xff]  }
 0x26f   :  { %4072 = vmatprep.subr.bf16.mxu0 %v5973_v11  ;;  %4154 = vmatprep.subr.bf16.mxu1 %v5976_v12  ;;  %v6046_v11 = vld [vmem:[#allocation11 + $0x3e8] ss:$16 sps:$4 sm:$0xff]   ;;  %v6319_v12 = vmov 0.0  }
 0x272   :  { %4073 = vmatpush1.bf16.msra.mxu0 %v5971_v15  ;;  %4155 = vmatpush1.bf16.msra.mxu1 %v5974_v16  ;;  %v3235_v15 = vsub.s32 2, %v6561_v57  ;;  %v3239_v16 = vsub.s32 3, %v6561_v57 }
 0x273   :  { %4074 = vmatprep.subr.bf16.mxu0 %v5979_v17  ;;  %4156 = vmatprep.subr.bf16.mxu1 %v5982_v18 }
 0x274   :  { %v3236_v17 = vrot.slane %v6567_v1, %v3235_v15 }
 0x276   :  { %4075 = vmatpush1.bf16.msra.mxu0 %v5977_v19  ;;  %4157 = vmatpush1.bf16.msra.mxu1 %v5980_v20 }
 0x277   :  { %4076 = vmatprep.subr.bf16.mxu0 %v5985_v21  ;;  %4158 = vmatprep.subr.bf16.mxu1 %v5988_v22 }
 0x27a   :  { %4077 = vmatpush1.bf16.msra.mxu0 %v5983_v23  ;;  %4159 = vmatpush1.bf16.msra.mxu1 %v5986_v24  ;;  %v3240_v24 = vrot.slane %v6567_v1, %v3239_v16  ;;  %v6051_v1 = vld [vmem:[#allocation13 + $0x10] sm:$0xff]  }
 0x27b   :  { %4078 = vmatprep.subr.bf16.mxu0 %v5991_v25  ;;  %4160 = vmatprep.subr.bf16.mxu1 %v5994_v14 }
 0x27e   :  { %4079 = vmatpush1.bf16.msra.mxu0 %v5989_v27  ;;  %4161 = vmatpush1.bf16.msra.mxu1 %v5992_v28 }
 0x27f   :  { %4080 = vmatprep.subr.bf16.mxu0 %v5997_v29  ;;  %4162 = vmatprep.subr.bf16.mxu1 %v6000_v30 }
 0x282   :  { %4081 = vmatpush1.bf16.msra.mxu0 %v5995_v31  ;;  %4163 = vmatpush1.bf16.msra.mxu1 %v5998_v32 }
 0x283   :  { %4082 = vmatprep.subr.bf16.mxu0 %v6003_v33  ;;  %4164 = vmatprep.subr.bf16.mxu1 %v6006_v13  ;;  %v6049_v13 = vld [vmem:[#allocation13] sm:$0xff]  }
 0x286   :  { %4083 = vmatpush1.bf16.msra.mxu0 %v6001_v34  ;;  %4165 = vmatpush1.bf16.msra.mxu1 %v6004_v35  ;;  %v6050_v35 = vld [vmem:[#allocation13 + $0x8] sm:$0xff]  }
 0x287   :  { %4084 = vmatprep.subr.bf16.mxu0 %v6009_v36  ;;  %4166 = vmatprep.subr.bf16.mxu1 %v6012_v37  ;;  %v6052_v36 = vld [vmem:[#allocation13 + $0x18] sm:$0xff]   ;;  %v6053_v37 = vld [vmem:[#allocation13 + $0x20] sm:$0xff]  }
 0x28a   :  { %4085 = vmatpush1.bf16.msra.mxu0 %v6007_v38  ;;  %4167 = vmatpush1.bf16.msra.mxu1 %v6010_v39  ;;  %v6054_v38 = vld [vmem:[#allocation13 + $0x28] sm:$0xff]   ;;  %v6055_v39 = vld [vmem:[#allocation13 + $0x30] sm:$0xff]  }
 0x28b   :  { %4086 = vmatprep.subr.bf16.mxu0 %v6015_v40  ;;  %4168 = vmatprep.subr.bf16.mxu1 %v6018_v41  ;;  %v6056_v40 = vld [vmem:[#allocation13 + $0x38] sm:$0xff]   ;;  %v6057_v41 = vld [vmem:[#allocation14] sm:$0xff]  }
 0x28e   :  { %4087 = vmatpush1.bf16.msra.mxu0 %v6013_v42  ;;  %4169 = vmatpush1.bf16.msra.mxu1 %v6016_v43  ;;  %v6058_v42 = vld [vmem:[#allocation14 + $0x8] sm:$0xff]   ;;  %v6059_v43 = vld [vmem:[#allocation14 + $0x10] sm:$0xff]  }
 0x28f   :  { %4088 = vmatprep.subr.bf16.mxu0 %v6021_v44  ;;  %4170 = vmatprep.subr.bf16.mxu1 %v6024_v45  ;;  %v6060_v44 = vld [vmem:[#allocation14 + $0x18] sm:$0xff]   ;;  %v6061_v45 = vld [vmem:[#allocation14 + $0x20] sm:$0xff]  }
 0x292   :  { %4089 = vmatpush1.bf16.msra.mxu0 %v6019_v46  ;;  %4171 = vmatpush1.bf16.msra.mxu1 %v6022_v47  ;;  %v6062_v46 = vld [vmem:[#allocation14 + $0x28] sm:$0xff]  }
 0x293   :  { %4090 = vmatprep.subr.bf16.mxu0 %v6027_v48  ;;  %4172 = vmatprep.subr.bf16.mxu1 %v6030_v50 }
 0x294   :  { %v2345_v55 = vpop.f32.mrb[8].mxu0  ;;  %v2427_v56 = vpop.f32.mrb[8].mxu1 }
 0x295   :  { %v2347_v58 = vpop.f32.mrb[9].mxu0  ;;  %v2429_v59 = vpop.f32.mrb[9].mxu1 }
 0x296   :  { %v2434_v60 = vmax.f32 %v2345_v55, %v2347_v58  ;;  %v2435_v61 = vmax.f32 %v2427_v56, %v2429_v59  ;;  %v2349_v62 = vpop.f32.mrb[10].mxu0  ;;  %v2431_v63 = vpop.f32.mrb[10].mxu1  ;;  %4091 = vmatpush1.bf16.msra.mxu0 %v6025_v51  ;;  %4173 = vmatpush1.bf16.msra.mxu1 %v6028_v52  ;;  %v5090_v56 = vld [vmem:[%s6638_s7] ss:$0 sm:$0xff] }
 0x297   :  { %v2350_v3 = vpop.f32.mrb[11].mxu0  ;;  %v2432_v4 = vpop.f32.mrb[11].mxu1  ;;  %4092 = vmatprep.subr.bf16.mxu0 %v6033_v53  ;;  %4174 = vmatprep.subr.bf16.mxu1 %v6036_v54 }
 0x298   :  { %v2436_v6 = vmax.f32 %v2434_v60, %v2435_v61  ;;  %v6065_v3 = vld [vmem:[#allocation16] sm:$0xff]   ;;  %v6066_v4 = vld [vmem:[#allocation16 + $0x8] sm:$0xff]  }
 0x29a   :  { %4093 = vmatpush1.bf16.msra.mxu0 %v6031_v0  ;;  %4175 = vmatpush1.bf16.msra.mxu1 %v6034_v2  ;;  %v3247_v27 = vadd.f32 %v3236_v17, %v2436_v6  ;;  %v6063_v0 = vld [vmem:[#allocation14 + $0x30] sm:$0xff]   ;;  %v6064_v2 = vld [vmem:[#allocation14 + $0x38] sm:$0xff]   ;;  %v6069_v6 = vld [vmem:[#allocation16 + $0x20] sm:$0xff]  }
 0x29b   :  { %4094 = vmatprep.subr.bf16.mxu0 %v6039_v26  ;;  %4176 = vmatprep.subr.bf16.mxu1 %v6042_v5  ;;  %v6067_v26 = vld [vmem:[#allocation16 + $0x10] sm:$0xff]   ;;  %v6068_v5 = vld [vmem:[#allocation16 + $0x18] sm:$0xff]  }
 0x29c   :  { %v3251_v32 = vmax.f32 %v3247_v27, 0.0 }
 0x29e   :  { %4095 = vmatpush1.bf16.msra.mxu0 %v6037_v49  ;;  %4177 = vmatpush1.bf16.msra.mxu1 %v6040_v7  ;;  %v3255_v34 = vpack.c.bf16 %v3251_v32, %v3251_v32  ;;  %v6070_v49 = vld [vmem:[#allocation16 + $0x28] sm:$0xff]   ;;  %v5091_v7 = vld [vmem:[%s6640_s9] ss:$0 sm:$0xff] }
 0x29f   :  { %4096 = vmatprep.subr.bf16.mxu0 %v6045_v8  ;;  %4178 = vmatprep.subr.bf16.mxu1 %v6048_v9 }
 0x2a2   :  { %4097 = vmatpush1.bf16.msra.mxu0 %v6043_v10  ;;  %4179 = vmatpush1.bf16.msra.mxu1 %v6046_v11 }
 0x2a3   :  { %5145 = vmatprep.subr.bf16.mxu0 %v6319_v12  ;;  %5165 = vmatprep.subr.bf16.mxu1 %v6319_v12 }
 0x2f8   :  { %v3131_v18 = vpop.f32.mrb[12].mxu0  ;;  %v3213_v19 = vpop.f32.mrb[12].mxu1 }
 0x2f9   :  { %v3133_v20 = vpop.f32.mrb[13].mxu0  ;;  %v3215_v21 = vpop.f32.mrb[13].mxu1 }
 0x2fa   :  { %v3220_v22 = vmax.f32 %v3131_v18, %v3133_v20  ;;  %v3221_v23 = vmax.f32 %v3213_v19, %v3215_v21  ;;  %v3135_v25 = vpop.f32.mrb[14].mxu0  ;;  %v3217_v14 = vpop.f32.mrb[14].mxu1  ;;  %v6071_v18 = vld [vmem:[#allocation16 + $0x30] sm:$0xff]   ;;  %v6072_v19 = vld [vmem:[#allocation16 + $0x38] sm:$0xff]   ;;  %v5100_v20 = vld [vmem:[%s6642_s11] ss:$0 sm:$0xff] }
 0x2fb   :  { %v3136_v28 = vpop.f32.mrb[15].mxu0  ;;  %v3218_v29 = vpop.f32.mrb[15].mxu1  ;;  %s6271_s11 = scalar_lea.vmem %s4547_s16, 128 }
 0x2fc   :  { %v3222_v30 = vmax.f32 %v3220_v22, %v3221_v23  ;;  %v5109_v28 = vld [vmem:[%s6644_s13] ss:$0 sm:$0xff]  ;;  %p6272_p2 = scmp.ne.s32.totalorder %s4547_s16, %s6271_s11  ;;  %p6277_p4 = scmp.lt.s32.totalorder %s6271_s11, %s6271_s11 }
 0x2fe   :  { %v3248_v31 = vadd.f32 %v3240_v24, %v3222_v30  ;;  %p6278_p5 = por %p6277_p4, %p6276_p3 }
 0x300   :  { %v3252_v33 = vmax.f32 %v3248_v31, 0.0  ;;  %p6279_p6 = pnand %p6278_p5, %p6272_p2 }
 0x302   :  { %v3256_v57 = vpack.c.bf16 %v3252_v33, %v3252_v33 }
 0x304   :  { %4098 = vmatprep.mubr.bf16.mxu0 %v3256_v57  ;;  %4180 = vmatprep.mubr.bf16.mxu1 %v3256_v57 }
 0x305   :  { %4099 = vmatmul.mubr.bf16.vlgmr.msra.gmra.mrb[16].mxu0 %v3255_v34  ;;  %4181 = vmatmul.mubr.bf16.vlgmr.msra.gmra.mrb[16].mxu1 %v3255_v34 }
 0x306   :  { %5146 = vmatpush3.bf16.msra.mxu0 %v6049_v13  ;;  %5161 = vmatprep.mubr.msk.bf16.mxu0 %vm6320_vm1, %v6319_v12 }
 0x307   :  { %5147 = vmatprep.subr.bf16.mxu0 %v6319_v12  ;;  %5181 = vmatprep.mubr.msk.bf16.mxu1 %vm6320_vm1, %v6319_v12 }
 0x308   :  { %5166 = vmatpush3.bf16.msra.mxu1 %v6057_v41 }
 0x309   :  { %5167 = vmatprep.subr.bf16.mxu1 %v6319_v12 }
 0x30a   :  { %5148 = vmatpush3.bf16.msra.mxu0 %v6050_v35 }
 0x30b   :  { %5149 = vmatprep.subr.bf16.mxu0 %v6319_v12 }
 0x30c   :  { %5168 = vmatpush3.bf16.msra.mxu1 %v6058_v42 }
 0x30d   :  { %5169 = vmatprep.subr.bf16.mxu1 %v6319_v12 }
 0x30e   :  { %5150 = vmatpush3.bf16.msra.mxu0 %v6051_v1 }
 0x30f   :  { %5151 = vmatprep.subr.bf16.mxu0 %v6319_v12 }
 0x310   :  { %5170 = vmatpush3.bf16.msra.mxu1 %v6059_v43 }
 0x311   :  { %5171 = vmatprep.subr.bf16.mxu1 %v6319_v12 }
 0x312   :  { %5152 = vmatpush3.bf16.msra.mxu0 %v6052_v36 }
 0x313   :  { %5153 = vmatprep.subr.bf16.mxu0 %v6319_v12 }
 0x314   :  { %5172 = vmatpush3.bf16.msra.mxu1 %v6060_v44 }
 0x315   :  { %5173 = vmatprep.subr.bf16.mxu1 %v6319_v12 }
 0x316   :  { %5154 = vmatpush3.bf16.msra.mxu0 %v6053_v37 }
 0x317   :  { %5155 = vmatprep.subr.bf16.mxu0 %v6319_v12 }
 0x318   :  { %5174 = vmatpush3.bf16.msra.mxu1 %v6061_v45 }
 0x319   :  { %5175 = vmatprep.subr.bf16.mxu1 %v6319_v12 }
 0x31a   :  { %5156 = vmatpush3.bf16.msra.mxu0 %v6054_v38 }
 0x31b   :  { %5157 = vmatprep.subr.bf16.mxu0 %v6319_v12 }
 0x31c   :  { %5176 = vmatpush3.bf16.msra.mxu1 %v6062_v46 }
 0x31d   :  { %5177 = vmatprep.subr.bf16.mxu1 %v6319_v12 }
 0x31e   :  { %5158 = vmatpush3.bf16.msra.mxu0 %v6055_v39 }
 0x31f   :  { %5159 = vmatprep.subr.bf16.mxu0 %v6319_v12 }
 0x320   :  { %5178 = vmatpush3.bf16.msra.mxu1 %v6063_v0 }
 0x321   :  { %5179 = vmatprep.subr.bf16.mxu1 %v6319_v12 }
 0x322   :  { %5160 = vmatpush3.bf16.msra.mxu0 %v6056_v40 }
 0x323   :  { %5185 = vmatprep.subr.bf16.mxu0 %v6319_v12 }
 0x324   :  { %5180 = vmatpush3.bf16.msra.mxu1 %v6064_v2 }
 0x3d8   :  { %v4100_v47 = vpop.f32.mrb[16].mxu0  ;;  %v4182_v48 = vpop.f32.mrb[16].mxu1 }
 0x3d9   :  { %v4102_v50 = vpop.f32.mrb[17].mxu0  ;;  %v4184_v51 = vpop.f32.mrb[17].mxu1 }
 0x3da   :  { %v4189_v52 = vmax.f32 %v4100_v47, %v4102_v50  ;;  %v4190_v53 = vmax.f32 %v4182_v48, %v4184_v51  ;;  %v4104_v54 = vpop.f32.mrb[18].mxu0  ;;  %v4186_v55 = vpop.f32.mrb[18].mxu1 }
 0x3db   :  { %v4105_v58 = vpop.f32.mrb[19].mxu0  ;;  %v4187_v59 = vpop.f32.mrb[19].mxu1 }
 0x3dc   :  { %v4191_v60 = vmax.f32 %v4189_v52, %v4190_v53 }
 0x3de   :  { %v4199_v61 = vadd.f32 %v5090_v56, %v4191_v60 }
 0x3e0   :  { %v4200_v62 = vmax.f32 %v4199_v61, 0.0 }
 0x3e2   :  { %v4201_v63 = vpack.c.bf16 %v4200_v62, %v4200_v62 }
 0x3e4   :  { %5162 = vmatmul.mubr.bf16.vlgmr.msra.gmra.mrb[20].mxu0 %v4201_v63 }
 0x3e5   :  { %5201 = vmatprep.mubr.msk.bf16.mxu0 %vm6320_vm1, %v6319_v12  ;;  %5186 = vmatpush3.bf16.msra.mxu0 %v6065_v3 }
 0x3e6   :  { %5187 = vmatprep.subr.bf16.mxu0 %v6319_v12 }
 0x3e9   :  { %5188 = vmatpush3.bf16.msra.mxu0 %v6066_v4 }
 0x3ea   :  { %5189 = vmatprep.subr.bf16.mxu0 %v6319_v12 }
 0x3ed   :  { %5190 = vmatpush3.bf16.msra.mxu0 %v6067_v26 }
 0x3ee   :  { %5191 = vmatprep.subr.bf16.mxu0 %v6319_v12 }
 0x3f1   :  { %5192 = vmatpush3.bf16.msra.mxu0 %v6068_v5 }
 0x3f2   :  { %5193 = vmatprep.subr.bf16.mxu0 %v6319_v12 }
 0x3f5   :  { %5194 = vmatpush3.bf16.msra.mxu0 %v6069_v6 }
 0x3f6   :  { %5195 = vmatprep.subr.bf16.mxu0 %v6319_v12 }
 0x3f9   :  { %5196 = vmatpush3.bf16.msra.mxu0 %v6070_v49 }
 0x3fa   :  { %5197 = vmatprep.subr.bf16.mxu0 %v6319_v12 }
 0x3fd   :  { %5198 = vmatpush3.bf16.msra.mxu0 %v6071_v18 }
 0x3fe   :  { %5199 = vmatprep.subr.bf16.mxu0 %v6319_v12 }
 0x401   :  { %5200 = vmatpush3.bf16.msra.mxu0 %v6072_v19 }
 0x4b7   :  { %v4307_v8 = vpop.f32.mrb[20].mxu0 }
 0x4b8   :  { %v4308_v9 = vadd.f32 %v5091_v7, %v4307_v8  ;;  %v5163_v10 = vpop.f32.mrb[21].mxu0 }
 0x4b9   :  { %v4310_v11 = vpop.f32.mrb[22].mxu0 }
 0x4ba   :  { %v4313_v15 = vmax.f32 %v4308_v9, 0.0  ;;  %v5164_v16 = vpop.f32.mrb[23].mxu0 }
 0x4bc   :  { %v4314_v17 = vpack.c.bf16 %v4313_v15, %v4313_v15 }
 0x4be   :  { %5182 = vmatmul.mubr.bf16.vlgmr.msra.gmra.mrb[20].mxu1 %v4314_v17 }
 0x591   :  { %v4420_v21 = vpop.f32.mrb[20].mxu1 }
 0x592   :  { %v4421_v22 = vadd.f32 %v5100_v20, %v4420_v21  ;;  %v5183_v23 = vpop.f32.mrb[21].mxu1 }
 0x593   :  { %v4423_v24 = vpop.f32.mrb[22].mxu1 }
 0x594   :  { %v4426_v25 = vmax.f32 %v4421_v22, 0.0  ;;  %v5184_v14 = vpop.f32.mrb[23].mxu1 }
 0x596   :  { %v4427_v27 = vpack.c.bf16 %v4426_v25, %v4426_v25 }
 0x598   :  { %5202 = vmatmul.mubr.bf16.vlgmr.msra.gmra.mrb[24].mxu0 %v4427_v27 }
 0x66b   :  { %v4533_v12 = vpop.f32.mrb[24].mxu0 }
 0x66c   :  { %v4534_v29 = vadd.f32 %v5109_v28, %v4533_v12  ;;  %v5203_v30 = vpop.f32.mrb[25].mxu0 }
 0x66d   :  { %v4536_v31 = vpop.f32.mrb[26].mxu0 }
 0x66e   :  { %4539 = vst [vmem:[#allocation17] sm:$0xff] %v4534_v29  ;;  %v5204_v32 = vpop.f32.mrb[27].mxu0 }
 0x66f   :  { %6282 = shalt.err (!%p6279_p6)
}
 0x670   :  { %s6283_s13 = scalar_lea.hbm %s6645_s14, 128 }
 0x671   :  { %p6284_p7 = scmp.ne.s32.totalorder %s6645_s14, %s6283_s13  ;;  %p6287_p8 = scmp.lt.u32.totalorder %s6283_s13, %s6645_s14 }
 0x673   :  { %p6289_p9 = pnand %p6287_p8, %p6284_p7 }
 0x675   :  { %6292 = shalt.err (!%p6289_p9)
}
 0x676   :  { %4549 = dma.vmem_to_hbm [thread:$0]  %s4547_s16, 128, %s6645_s14, [#allocation4]  }
 0x677   :  { %6303 = dma.done.wait [#allocation4], 128  }
 0x678   :  { %6304 = vsyncadd [#allocation4], 4294967168 }
 0x679   :  { %4553 = vsyncpa [#allocation3], 1 }
 0x67a   :  { %4554 = vsyncpa [#allocation6], 1 }
 0x67b   :  { %4555 = vsyncpa [#allocation9], 1 }
 0x67c   :  { %4556 = vsyncpa [#allocation12], 1 }
 0x67d   :  { %4557 = vsyncpa [#allocation15], 1 }
 0x67e   :  { %4558 = vsyncpa [#allocation4], 1 }

</bundles_post_ra>
